<compile_context>
chip_gen: v5e
topology: v5e:2x2
jax: 0.10.0
libtpu: 0.0.40
codegen_flags: <defaults>
</compile_context>

<pallas_src>
import functools

import jax
import jax.numpy as jnp
from jax import lax
from jax.experimental import pallas as pl
from jax.experimental.pallas import tpu as pltpu


# ------------------------------ Pallas kernel --------------------------------

def _build_patch_stride2(xph_ref, b4, patch_ref, cin, wh, f):
    """Layer-1 im2col: 9 lane-shifted space-to-depth phase planes -> (9*cin, f).

    xph_ref rows are (sample*4 + phase); phase p = (row parity)*2 + col parity.
    Output pixel (i, j) of the stride-2 conv needs input (2i+kh, 2j+kw), i.e.
    phase ((kh%2, kw%2)) at flat half-res offset (i + kh//2)*wh + (j + kw//2).
    """
    dt = patch_ref.dtype
    for t in range(9):
        kh, kw = t // 3, t % 3
        p = (kh % 2) * 2 + (kw % 2)
        s = (kh // 2) * wh + (kw // 2)          # lane shift inside the phase plane
        r0 = t * cin
        plane = xph_ref[b4 + p]                 # (cin, f)
        if s == 0:
            patch_ref[r0:r0 + cin, :] = plane
        else:
            patch_ref[r0:r0 + cin, 0:f - s] = plane[:, s:]
            patch_ref[r0:r0 + cin, f - s:f] = jnp.zeros((cin, s), dt)


def _build_patch_stride1(state_ref, patch_ref, wh, f):
    """Stride-1 im2col: 9 lane-shifted copies of the (32, f) state -> (288, f).

    Tap (kh, kw) of output pixel q reads state pixel q + kh*wh + kw; shifts
    only contaminate the garbage margin (sliced away in the wrapper).
    """
    cin = state_ref.shape[0]
    dt = patch_ref.dtype
    for t in range(9):
        kh, kw = t // 3, t % 3
        s = kh * wh + kw
        r0 = t * cin
        if s == 0:
            patch_ref[r0:r0 + cin, :] = state_ref[...]
        else:
            patch_ref[r0:r0 + cin, 0:f - s] = state_ref[:, s:]
            patch_ref[r0:r0 + cin, f - s:f] = jnp.zeros((cin, s), dt)


def _matmul_bias_relu(patch_ref, w_ref, b_ref, write_chunk, f, chunk):
    """(Cout, K) @ (K, f) in static lane chunks; f32 accumulate + f32 epilogue."""
    w = w_ref[...]                              # (Cout, K), MXU compute dtype
    b = b_ref[...]                              # (Cout, 1), f32
    for c0 in range(0, f, chunk):
        cw = min(chunk, f - c0)
        acc = jnp.dot(w, patch_ref[:, c0:c0 + cw],
                      preferred_element_type=jnp.float32)   # (Cout, cw) f32
        write_chunk(c0, cw, jnp.maximum(acc + b, 0.0))


def _encoder_kernel(xph_ref, w1_ref, b1_ref, w2_ref, b2_ref, w3_ref, b3_ref,
                    w4_ref, b4_ref, out_ref, patch1_ref, patch_ref, state_ref,
                    *, cin, wh, bsz, chunk):
    """Fused conv1(s2)+ReLU -> conv2..4(s1)+ReLU for one block of bsz samples."""
    f = state_ref.shape[1]
    cdt = state_ref.dtype

    def to_state(c0, cw, y):
        state_ref[:, c0:c0 + cw] = y.astype(cdt)

    def sample_body(b, carry):
        # ---- layer 1 (stride 2); /255-0.5 is folded into w1/b1 ----
        _build_patch_stride2(xph_ref, b * 4, patch1_ref, cin, wh, f)
        _matmul_bias_relu(patch1_ref, w1_ref, b1_ref, to_state, f, chunk)

        # ---- layers 2..4 (stride 1) on the same (hh, wh) frame ----
        for lw_ref, lb_ref, last in ((w2_ref, b2_ref, False),
                                     (w3_ref, b3_ref, False),
                                     (w4_ref, b4_ref, True)):
            _build_patch_stride1(state_ref, patch_ref, wh, f)
            if last:
                def to_out(c0, cw, y, b=b):
                    out_ref[b, :, c0:c0 + cw] = y            # lane-dense f32 slab
                _matmul_bias_relu(patch_ref, lw_ref, lb_ref, to_out, f, chunk)
            else:
                _matmul_bias_relu(patch_ref, lw_ref, lb_ref, to_state, f, chunk)
        return carry

    lax.fori_loop(0, bsz, sample_body, 0)


# ------------------------------ JAX wrapper -----------------------------------

def _space_to_depth_flat(obs):
    """(N, C, H, W) -> (N*4, C, (H//2)*(W//2)); row p = sample*4 + phase."""
    n, c, h, w = obs.shape
    hh, wh = h // 2, w // 2
    x = obs.reshape(n, c, hh, 2, wh, 2)
    x = jnp.transpose(x, (0, 3, 5, 1, 2, 4))     # (n, ph, pw, c, hh, wh)
    return x.reshape(n * 4, c, hh * wh)


def _pick_block_b(n):
    for cand in (8, 4, 2):
        if n % cand == 0:
            return cand
    return 1


def encoder_forward(obs, params, *, compute_dtype=jnp.float32, block_b=None,
                    lane_chunk=512):
    """obs: (N, C, H, W) raw pixels in [0, 255]; params from prepare_params()."""
    n, c, h, w = obs.shape
    assert h % 2 == 0 and w % 2 == 0, "even H, W required (e.g. 16x16, 84x84)"
    hh, wh = h // 2, w // 2
    oh4, ow4 = hh - 7, wh - 7                    # valid size after the 4-conv chain
    assert oh4 >= 1 and ow4 >= 1, "input too small for the 4-conv chain"
    f = hh * wh
    cout = params["w2"].shape[0]

    bsz = _pick_block_b(n) if block_b is None else block_b
    assert n % bsz == 0

    xph = _space_to_depth_flat(obs).astype(compute_dtype)    # (n*4, c, f)

    kernel = functools.partial(_encoder_kernel, cin=c, wh=wh, bsz=bsz,
                               chunk=lane_chunk)
    gi2 = lambda i: (0, 0)                       # grid-invariant weights/biases
    out = pl.pallas_call(
        kernel,
        out_shape=jax.ShapeDtypeStruct((n, cout, f), jnp.float32),
        grid=(n // bsz,),
        in_specs=[
            pl.BlockSpec((4 * bsz, c, f), lambda i: (i, 0, 0)),
            pl.BlockSpec(params["w1"].shape, gi2),
            pl.BlockSpec(params["b1"].shape, gi2),
            pl.BlockSpec(params["w2"].shape, gi2),
            pl.BlockSpec(params["b2"].shape, gi2),
            pl.BlockSpec(params["w3"].shape, gi2),
            pl.BlockSpec(params["b3"].shape, gi2),
            pl.BlockSpec(params["w4"].shape, gi2),
            pl.BlockSpec(params["b4"].shape, gi2),
        ],
        out_specs=pl.BlockSpec((bsz, cout, f), lambda i: (i, 0, 0)),
        scratch_shapes=[
            pltpu.VMEM((9 * c, f), compute_dtype),       # layer-1 patch slab
            pltpu.VMEM((9 * cout, f), compute_dtype),    # layer-2..4 patch slab
            pltpu.VMEM((cout, f), compute_dtype),        # inter-layer state
        ],
        compiler_params=pltpu.CompilerParams(
            dimension_semantics=("parallel",)),          # 2 TCs on v7x
    )(xph, params["w1"], params["b1"], params["w2"], params["b2"],
      params["w3"], params["b3"], params["w4"], params["b4"])

    # Valid region is the top-left (oh4, ow4) of each (hh, wh) frame; the
    # result is already in PyTorch (C, H, W) flatten order.
    out = out.reshape(n, cout, hh, wh)[:, :, :oh4, :ow4]
    return out.reshape(n, cout * oh4 * ow4)


# ------------------------- parameter construction -----------------------------

def init_params(key, in_channels, cout=32):
    """Raw PyTorch-layout params (scale-matched Gaussian stands in for
    drqv2's orthogonal init in this synthetic kernel test)."""
    ks = jax.random.split(key, 4)

    def conv_w(k, cin, co):
        fan_in = cin * 9
        return jax.random.normal(k, (co, cin, 3, 3), jnp.float32) / jnp.sqrt(fan_in)

    return {
        "w1": conv_w(ks[0], in_channels, cout), "b1": jnp.zeros((cout,), jnp.float32),
        "w2": conv_w(ks[1], cout, cout),        "b2": jnp.zeros((cout,), jnp.float32),
        "w3": conv_w(ks[2], cout, cout),        "b3": jnp.zeros((cout,), jnp.float32),
        "w4": conv_w(ks[3], cout, cout),        "b4": jnp.zeros((cout,), jnp.float32),
    }


def prepare_params(raw, compute_dtype=jnp.float32):
    """One-time repack for the fused kernel:
       * (Cout, Cin, 3, 3) -> (Cout, 9*Cin), tap-major / channel-minor, cast to
         the MXU compute dtype (f32 or bf16).
       * biases -> (Cout, 1) f32 (epilogue stays f32).
       * /255 - 0.5 normalization folded into layer 1 (exact for VALID conv):
         conv(x/255 - 0.5, w) + b == conv(x, w/255) + (b - 0.5*sum(w)).
    """
    def pack(wt):
        co, ci = wt.shape[0], wt.shape[1]
        return jnp.transpose(wt, (0, 2, 3, 1)).reshape(co, 9 * ci).astype(compute_dtype)

    w1 = raw["w1"].astype(jnp.float32)
    b1 = raw["b1"].astype(jnp.float32)
    out = {
        "w1": pack(w1 / 255.0),
        "b1": (b1 - 0.5 * jnp.sum(w1, axis=(1, 2, 3))).reshape(-1, 1),
    }
    for i in (2, 3, 4):
        out[f"w{i}"] = pack(raw[f"w{i}"].astype(jnp.float32))
        out[f"b{i}"] = raw[f"b{i}"].astype(jnp.float32).reshape(-1, 1)
    return out


# ------------------------------ reference -------------------------------------

def encoder_forward_ref(obs, raw_params):
    """Pure-JAX reference (lax.conv, raw params) for correctness checking."""
    x = obs / 255.0 - 0.5
    strides = [2, 1, 1, 1]
    for i, s in enumerate(strides, start=1):
        wt, b = raw_params[f"w{i}"], raw_params[f"b{i}"]
        x = jax.lax.conv_general_dilated(
            x, wt, window_strides=(s, s), padding="VALID",
            dimension_numbers=("NCHW", "OIHW", "NCHW"),
            precision=jax.lax.Precision.HIGHEST)
        x = jnp.maximum(x + b[None, :, None, None], 0.0)
    return x.reshape(x.shape[0], -1)


# -------------------------------- main -----------------------------------------

if __name__ == "__main__":
    key = jax.random.PRNGKey(0)
    k_obs, k_par = jax.random.split(key)

    # Small shapes consistent with the module: obs_shape = (4, 16, 16), batch=2.
    # Spatial chain with 3x3 convs: 16 -> 7 (stride 2) -> 5 -> 3 -> 1.
    N, C, H, W = 2, 4, 16, 16
    obs = jax.random.uniform(k_obs, (N, C, H, W), jnp.float32, 0.0, 255.0)

    raw = init_params(k_par, C)
    ref = jax.block_until_ready(encoder_forward_ref(obs, raw))

    # f32 path: tight check against the f32 reference.
    params32 = prepare_params(raw, jnp.float32)
    fwd32 = jax.jit(functools.partial(encoder_forward, compute_dtype=jnp.float32))
    out32 = jax.block_until_ready(fwd32(obs, params32))
    assert out32.shape == (N, 32 * 1 * 1), out32.shape
    assert jnp.allclose(out32, ref, atol=2e-4, rtol=2e-4), \
        float(jnp.max(jnp.abs(out32 - ref)))

    # bf16 MXU path (same kernel): bf16 operands, f32 accumulation/epilogue.
    params_bf = prepare_params(raw, jnp.bfloat16)
    fwd_bf = jax.jit(functools.partial(encoder_forward, compute_dtype=jnp.bfloat16))
    out_bf = jax.block_until_ready(fwd_bf(obs, params_bf))
    assert out_bf.shape == (N, 32 * 1 * 1), out_bf.shape
    assert jnp.allclose(out_bf, ref, atol=5e-2, rtol=5e-2), \
        float(jnp.max(jnp.abs(out_bf - ref)))

    print("KERNEL_OK")
</pallas_src>

<mosaic_0001>
module attributes {stable_mosaic.version = 11 : i64} {
  func.func @_encoder_kernel(%arg0: i32, %arg1: memref<8x4x64xf32, #tpu.memory_space<vmem>>, %arg2: memref<32x36xf32, #tpu.memory_space<vmem>>, %arg3: memref<32x1xf32, #tpu.memory_space<vmem>>, %arg4: memref<32x288xf32, #tpu.memory_space<vmem>>, %arg5: memref<32x1xf32, #tpu.memory_space<vmem>>, %arg6: memref<32x288xf32, #tpu.memory_space<vmem>>, %arg7: memref<32x1xf32, #tpu.memory_space<vmem>>, %arg8: memref<32x288xf32, #tpu.memory_space<vmem>>, %arg9: memref<32x1xf32, #tpu.memory_space<vmem>>, %arg10: memref<2x32x64xf32, #tpu.memory_space<vmem>>, %arg11: memref<36x64xf32, #tpu.memory_space<vmem>>, %arg12: memref<288x64xf32, #tpu.memory_space<vmem>>, %arg13: memref<32x64xf32, #tpu.memory_space<vmem>>) attributes {dimension_semantics = [#tpu.dimension_semantics<parallel>], iteration_bounds = array<i64: 1>, scalar_prefetch = 0 : i64, scratch_operands = 3 : i64, tpu.core_type = #tpu.core_type<tc>, window_params = [{transform_indices = @transform_0, window_bounds = array<i64: 8, 4, 64>}, {pipeline_mode = #tpu.pipeline_mode<synchronous>, transform_indices = @transform_1, window_bounds = array<i64: 32, 36>}, {pipeline_mode = #tpu.pipeline_mode<synchronous>, transform_indices = @transform_2, window_bounds = array<i64: 32, 1>}, {pipeline_mode = #tpu.pipeline_mode<synchronous>, transform_indices = @transform_3, window_bounds = array<i64: 32, 288>}, {pipeline_mode = #tpu.pipeline_mode<synchronous>, transform_indices = @transform_4, window_bounds = array<i64: 32, 1>}, {pipeline_mode = #tpu.pipeline_mode<synchronous>, transform_indices = @transform_5, window_bounds = array<i64: 32, 288>}, {pipeline_mode = #tpu.pipeline_mode<synchronous>, transform_indices = @transform_6, window_bounds = array<i64: 32, 1>}, {pipeline_mode = #tpu.pipeline_mode<synchronous>, transform_indices = @transform_7, window_bounds = array<i64: 32, 288>}, {pipeline_mode = #tpu.pipeline_mode<synchronous>, transform_indices = @transform_8, window_bounds = array<i64: 32, 1>}, {transform_indices = @transform_9, window_bounds = array<i64: 2, 32, 64>}]} {
    %c0_i32 = arith.constant 0 : i32
    %c2_i32 = arith.constant 2 : i32
    %0 = arith.addi %c0_i32, %c2_i32 : i32
    %c1_i32 = arith.constant 1 : i32
    scf.for %arg14 = %c0_i32 to %0 step %c1_i32  : i32 {
      %c4_i32 = arith.constant 4 : i32
      %1 = arith.muli %arg14, %c4_i32 : i32
      %c0_i32_1 = arith.constant 0 : i32
      %2 = arith.addi %1, %c0_i32_1 : i32
      %3 = arith.index_cast %2 : i32 to index
      %c0 = arith.constant 0 : index
      %c0_2 = arith.constant 0 : index
      %4 = vector.load %arg1[%3, %c0, %c0_2] : memref<8x4x64xf32, #tpu.memory_space<vmem>>, vector<1x4x64xf32>
      %5 = vector.shape_cast %4 : vector<1x4x64xf32> to vector<4x64xf32>
      %c0_3 = arith.constant 0 : index
      %c0_4 = arith.constant 0 : index
      %6 = vector.load %arg11[%c0_3, %c0_4] : memref<36x64xf32, #tpu.memory_space<vmem>>, vector<4x64xf32>
      tpu.vector_store %arg11[%c0_3, %c0_4], %5 {strides = array<i32>} : memref<36x64xf32, #tpu.memory_space<vmem>>, vector<4x64xf32>,
      %c1_i32_5 = arith.constant 1 : i32
      %7 = arith.addi %1, %c1_i32_5 : i32
      %8 = arith.index_cast %7 : i32 to index
      %c0_6 = arith.constant 0 : index
      %c0_7 = arith.constant 0 : index
      %9 = vector.load %arg1[%8, %c0_6, %c0_7] : memref<8x4x64xf32, #tpu.memory_space<vmem>>, vector<1x4x64xf32>
      %10 = vector.shape_cast %9 : vector<1x4x64xf32> to vector<4x64xf32>
      %c4 = arith.constant 4 : index
      %c0_8 = arith.constant 0 : index
      %11 = vector.load %arg11[%c4, %c0_8] : memref<36x64xf32, #tpu.memory_space<vmem>>, vector<4x64xf32>
      tpu.vector_store %arg11[%c4, %c0_8], %10 {strides = array<i32>} : memref<36x64xf32, #tpu.memory_space<vmem>>, vector<4x64xf32>,
      %c0_i32_9 = arith.constant 0 : i32
      %12 = arith.addi %1, %c0_i32_9 : i32
      %13 = arith.index_cast %12 : i32 to index
      %c0_10 = arith.constant 0 : index
      %c0_11 = arith.constant 0 : index
      %14 = vector.load %arg1[%13, %c0_10, %c0_11] : memref<8x4x64xf32, #tpu.memory_space<vmem>>, vector<1x4x64xf32>
      %15 = vector.shape_cast %14 : vector<1x4x64xf32> to vector<4x64xf32>
      %16 = vector.extract_strided_slice %15 {offsets = [0, 1], sizes = [4, 63], strides = [1, 1]} : vector<4x64xf32> to vector<4x63xf32>
      %c8 = arith.constant 8 : index
      %c0_12 = arith.constant 0 : index
      %17 = vector.load %arg11[%c8, %c0_12] : memref<36x64xf32, #tpu.memory_space<vmem>>, vector<4x63xf32>
      tpu.vector_store %arg11[%c8, %c0_12], %16 {strides = array<i32>} : memref<36x64xf32, #tpu.memory_space<vmem>>, vector<4x63xf32>,
      %cst = arith.constant 0.000000e+00 : f32
      %18 = vector.broadcast %cst : f32 to vector<4x1xf32>
      %c8_13 = arith.constant 8 : index
      %c63 = arith.constant 63 : index
      %19 = vector.load %arg11[%c8_13, %c63] : memref<36x64xf32, #tpu.memory_space<vmem>>, vector<4x1xf32>
      tpu.vector_store %arg11[%c8_13, %c63], %18 {strides = array<i32>} : memref<36x64xf32, #tpu.memory_space<vmem>>, vector<4x1xf32>,
      %c2_i32_14 = arith.constant 2 : i32
      %20 = arith.addi %1, %c2_i32_14 : i32
      %21 = arith.index_cast %20 : i32 to index
      %c0_15 = arith.constant 0 : index
      %c0_16 = arith.constant 0 : index
      %22 = vector.load %arg1[%21, %c0_15, %c0_16] : memref<8x4x64xf32, #tpu.memory_space<vmem>>, vector<1x4x64xf32>
      %23 = vector.shape_cast %22 : vector<1x4x64xf32> to vector<4x64xf32>
      %c12 = arith.constant 12 : index
      %c0_17 = arith.constant 0 : index
      %24 = vector.load %arg11[%c12, %c0_17] : memref<36x64xf32, #tpu.memory_space<vmem>>, vector<4x64xf32>
      tpu.vector_store %arg11[%c12, %c0_17], %23 {strides = array<i32>} : memref<36x64xf32, #tpu.memory_space<vmem>>, vector<4x64xf32>,
      %c3_i32 = arith.constant 3 : i32
      %25 = arith.addi %1, %c3_i32 : i32
      %26 = arith.index_cast %25 : i32 to index
      %c0_18 = arith.constant 0 : index
      %c0_19 = arith.constant 0 : index
      %27 = vector.load %arg1[%26, %c0_18, %c0_19] : memref<8x4x64xf32, #tpu.memory_space<vmem>>, vector<1x4x64xf32>
      %28 = vector.shape_cast %27 : vector<1x4x64xf32> to vector<4x64xf32>
      %c16 = arith.constant 16 : index
      %c0_20 = arith.constant 0 : index
      %29 = vector.load %arg11[%c16, %c0_20] : memref<36x64xf32, #tpu.memory_space<vmem>>, vector<4x64xf32>
      tpu.vector_store %arg11[%c16, %c0_20], %28 {strides = array<i32>} : memref<36x64xf32, #tpu.memory_space<vmem>>, vector<4x64xf32>,
      %c2_i32_21 = arith.constant 2 : i32
      %30 = arith.addi %1, %c2_i32_21 : i32
      %31 = arith.index_cast %30 : i32 to index
      %c0_22 = arith.constant 0 : index
      %c0_23 = arith.constant 0 : index
      %32 = vector.load %arg1[%31, %c0_22, %c0_23] : memref<8x4x64xf32, #tpu.memory_space<vmem>>, vector<1x4x64xf32>
      %33 = vector.shape_cast %32 : vector<1x4x64xf32> to vector<4x64xf32>
      %34 = vector.extract_strided_slice %33 {offsets = [0, 1], sizes = [4, 63], strides = [1, 1]} : vector<4x64xf32> to vector<4x63xf32>
      %c20 = arith.constant 20 : index
      %c0_24 = arith.constant 0 : index
      %35 = vector.load %arg11[%c20, %c0_24] : memref<36x64xf32, #tpu.memory_space<vmem>>, vector<4x63xf32>
      tpu.vector_store %arg11[%c20, %c0_24], %34 {strides = array<i32>} : memref<36x64xf32, #tpu.memory_space<vmem>>, vector<4x63xf32>,
      %cst_25 = arith.constant 0.000000e+00 : f32
      %36 = vector.broadcast %cst_25 : f32 to vector<4x1xf32>
      %c20_26 = arith.constant 20 : index
      %c63_27 = arith.constant 63 : index
      %37 = vector.load %arg11[%c20_26, %c63_27] : memref<36x64xf32, #tpu.memory_space<vmem>>, vector<4x1xf32>
      tpu.vector_store %arg11[%c20_26, %c63_27], %36 {strides = array<i32>} : memref<36x64xf32, #tpu.memory_space<vmem>>, vector<4x1xf32>,
      %c0_i32_28 = arith.constant 0 : i32
      %38 = arith.addi %1, %c0_i32_28 : i32
      %39 = arith.index_cast %38 : i32 to index
      %c0_29 = arith.constant 0 : index
      %c0_30 = arith.constant 0 : index
      %40 = vector.load %arg1[%39, %c0_29, %c0_30] : memref<8x4x64xf32, #tpu.memory_space<vmem>>, vector<1x4x64xf32>
      %41 = vector.shape_cast %40 : vector<1x4x64xf32> to vector<4x64xf32>
      %42 = vector.extract_strided_slice %41 {offsets = [0, 8], sizes = [4, 56], strides = [1, 1]} : vector<4x64xf32> to vector<4x56xf32>
      %c24 = arith.constant 24 : index
      %c0_31 = arith.constant 0 : index
      %43 = vector.load %arg11[%c24, %c0_31] : memref<36x64xf32, #tpu.memory_space<vmem>>, vector<4x56xf32>
      tpu.vector_store %arg11[%c24, %c0_31], %42 {strides = array<i32>} : memref<36x64xf32, #tpu.memory_space<vmem>>, vector<4x56xf32>,
      %cst_32 = arith.constant 0.000000e+00 : f32
      %44 = vector.broadcast %cst_32 : f32 to vector<4x8xf32>
      %c24_33 = arith.constant 24 : index
      %c56 = arith.constant 56 : index
      %45 = vector.load %arg11[%c24_33, %c56] : memref<36x64xf32, #tpu.memory_space<vmem>>, vector<4x8xf32>
      tpu.vector_store %arg11[%c24_33, %c56], %44 {strides = array<i32>} : memref<36x64xf32, #tpu.memory_space<vmem>>, vector<4x8xf32>,
      %c1_i32_34 = arith.constant 1 : i32
      %46 = arith.addi %1, %c1_i32_34 : i32
      %47 = arith.index_cast %46 : i32 to index
      %c0_35 = arith.constant 0 : index
      %c0_36 = arith.constant 0 : index
      %48 = vector.load %arg1[%47, %c0_35, %c0_36] : memref<8x4x64xf32, #tpu.memory_space<vmem>>, vector<1x4x64xf32>
      %49 = vector.shape_cast %48 : vector<1x4x64xf32> to vector<4x64xf32>
      %50 = vector.extract_strided_slice %49 {offsets = [0, 8], sizes = [4, 56], strides = [1, 1]} : vector<4x64xf32> to vector<4x56xf32>
      %c28 = arith.constant 28 : index
      %c0_37 = arith.constant 0 : index
      %51 = vector.load %arg11[%c28, %c0_37] : memref<36x64xf32, #tpu.memory_space<vmem>>, vector<4x56xf32>
      tpu.vector_store %arg11[%c28, %c0_37], %50 {strides = array<i32>} : memref<36x64xf32, #tpu.memory_space<vmem>>, vector<4x56xf32>,
      %cst_38 = arith.constant 0.000000e+00 : f32
      %52 = vector.broadcast %cst_38 : f32 to vector<4x8xf32>
      %c28_39 = arith.constant 28 : index
      %c56_40 = arith.constant 56 : index
      %53 = vector.load %arg11[%c28_39, %c56_40] : memref<36x64xf32, #tpu.memory_space<vmem>>, vector<4x8xf32>
      tpu.vector_store %arg11[%c28_39, %c56_40], %52 {strides = array<i32>} : memref<36x64xf32, #tpu.memory_space<vmem>>, vector<4x8xf32>,
      %c0_i32_41 = arith.constant 0 : i32
      %54 = arith.addi %1, %c0_i32_41 : i32
      %55 = arith.index_cast %54 : i32 to index
      %c0_42 = arith.constant 0 : index
      %c0_43 = arith.constant 0 : index
      %56 = vector.load %arg1[%55, %c0_42, %c0_43] : memref<8x4x64xf32, #tpu.memory_space<vmem>>, vector<1x4x64xf32>
      %57 = vector.shape_cast %56 : vector<1x4x64xf32> to vector<4x64xf32>
      %58 = vector.extract_strided_slice %57 {offsets = [0, 9], sizes = [4, 55], strides = [1, 1]} : vector<4x64xf32> to vector<4x55xf32>
      %c32 = arith.constant 32 : index
      %c0_44 = arith.constant 0 : index
      %59 = vector.load %arg11[%c32, %c0_44] : memref<36x64xf32, #tpu.memory_space<vmem>>, vector<4x55xf32>
      tpu.vector_store %arg11[%c32, %c0_44], %58 {strides = array<i32>} : memref<36x64xf32, #tpu.memory_space<vmem>>, vector<4x55xf32>,
      %cst_45 = arith.constant 0.000000e+00 : f32
      %60 = vector.broadcast %cst_45 : f32 to vector<4x9xf32>
      %c32_46 = arith.constant 32 : index
      %c55 = arith.constant 55 : index
      %61 = vector.load %arg11[%c32_46, %c55] : memref<36x64xf32, #tpu.memory_space<vmem>>, vector<4x9xf32>
      tpu.vector_store %arg11[%c32_46, %c55], %60 {strides = array<i32>} : memref<36x64xf32, #tpu.memory_space<vmem>>, vector<4x9xf32>,
      %c0_47 = arith.constant 0 : index
      %c0_48 = arith.constant 0 : index
      %62 = vector.load %arg2[%c0_47, %c0_48] : memref<32x36xf32, #tpu.memory_space<vmem>>, vector<32x36xf32>
      %c0_49 = arith.constant 0 : index
      %c0_50 = arith.constant 0 : index
      %63 = vector.load %arg3[%c0_49, %c0_50] : memref<32x1xf32, #tpu.memory_space<vmem>>, vector<32x1xf32>
      %c0_51 = arith.constant 0 : index
      %c0_52 = arith.constant 0 : index
      %64 = vector.load %arg11[%c0_51, %c0_52] : memref<36x64xf32, #tpu.memory_space<vmem>>, vector<36x64xf32>
      %cst_53 = arith.constant dense<0.000000e+00> : vector<32x64xf32>
      %65 = tpu.matmul %62, %64, %cst_53 {dimension_numbers = #tpu.dot_dimension_numbers<[1], [0], [0], [1], [0, 0, 1, 1], [], []>} : vector<32x36xf32>, vector<36x64xf32>, vector<32x64xf32> -> vector<32x64xf32>
      %66 = vector.broadcast %63 : vector<32x1xf32> to vector<32x64xf32>
      %67 = arith.addf %65, %66 : vector<32x64xf32>
      %cst_54 = arith.constant 0.000000e+00 : f32
      %68 = vector.broadcast %cst_54 : f32 to vector<32x64xf32>
      %69 = arith.maximumf %67, %68 : vector<32x64xf32>
      %c0_55 = arith.constant 0 : index
      %c0_56 = arith.constant 0 : index
      %70 = vector.load %arg13[%c0_55, %c0_56] : memref<32x64xf32, #tpu.memory_space<vmem>>, vector<32x64xf32>
      tpu.vector_store %arg13[%c0_55, %c0_56], %69 {strides = array<i32>} : memref<32x64xf32, #tpu.memory_space<vmem>>, vector<32x64xf32>,
      %c0_57 = arith.constant 0 : index
      %c0_58 = arith.constant 0 : index
      %71 = vector.load %arg13[%c0_57, %c0_58] : memref<32x64xf32, #tpu.memory_space<vmem>>, vector<32x64xf32>
      %c0_59 = arith.constant 0 : index
      %c0_60 = arith.constant 0 : index
      %72 = vector.load %arg12[%c0_59, %c0_60] : memref<288x64xf32, #tpu.memory_space<vmem>>, vector<32x64xf32>
      tpu.vector_store %arg12[%c0_59, %c0_60], %71 {strides = array<i32>} : memref<288x64xf32, #tpu.memory_space<vmem>>, vector<32x64xf32>,
      %c0_61 = arith.constant 0 : index
      %c1 = arith.constant 1 : index
      %73 = vector.load %arg13[%c0_61, %c1] : memref<32x64xf32, #tpu.memory_space<vmem>>, vector<32x63xf32>
      %c32_62 = arith.constant 32 : index
      %c0_63 = arith.constant 0 : index
      %74 = vector.load %arg12[%c32_62, %c0_63] : memref<288x64xf32, #tpu.memory_space<vmem>>, vector<32x63xf32>
      tpu.vector_store %arg12[%c32_62, %c0_63], %73 {strides = array<i32>} : memref<288x64xf32, #tpu.memory_space<vmem>>, vector<32x63xf32>,
      %cst_64 = arith.constant 0.000000e+00 : f32
      %75 = vector.broadcast %cst_64 : f32 to vector<32x1xf32>
      %c32_65 = arith.constant 32 : index
      %c63_66 = arith.constant 63 : index
      %76 = vector.load %arg12[%c32_65, %c63_66] : memref<288x64xf32, #tpu.memory_space<vmem>>, vector<32x1xf32>
      tpu.vector_store %arg12[%c32_65, %c63_66], %75 {strides = array<i32>} : memref<288x64xf32, #tpu.memory_space<vmem>>, vector<32x1xf32>,
      %c0_67 = arith.constant 0 : index
      %c2 = arith.constant 2 : index
      %77 = vector.load %arg13[%c0_67, %c2] : memref<32x64xf32, #tpu.memory_space<vmem>>, vector<32x62xf32>
      %c64 = arith.constant 64 : index
      %c0_68 = arith.constant 0 : index
      %78 = vector.load %arg12[%c64, %c0_68] : memref<288x64xf32, #tpu.memory_space<vmem>>, vector<32x62xf32>
      tpu.vector_store %arg12[%c64, %c0_68], %77 {strides = array<i32>} : memref<288x64xf32, #tpu.memory_space<vmem>>, vector<32x62xf32>,
      %cst_69 = arith.constant 0.000000e+00 : f32
      %79 = vector.broadcast %cst_69 : f32 to vector<32x2xf32>
      %c64_70 = arith.constant 64 : index
      %c62 = arith.constant 62 : index
      %80 = vector.load %arg12[%c64_70, %c62] : memref<288x64xf32, #tpu.memory_space<vmem>>, vector<32x2xf32>
      tpu.vector_store %arg12[%c64_70, %c62], %79 {strides = array<i32>} : memref<288x64xf32, #tpu.memory_space<vmem>>, vector<32x2xf32>,
      %c0_71 = arith.constant 0 : index
      %c8_72 = arith.constant 8 : index
      %81 = vector.load %arg13[%c0_71, %c8_72] : memref<32x64xf32, #tpu.memory_space<vmem>>, vector<32x56xf32>
      %c96 = arith.constant 96 : index
      %c0_73 = arith.constant 0 : index
      %82 = vector.load %arg12[%c96, %c0_73] : memref<288x64xf32, #tpu.memory_space<vmem>>, vector<32x56xf32>
      tpu.vector_store %arg12[%c96, %c0_73], %81 {strides = array<i32>} : memref<288x64xf32, #tpu.memory_space<vmem>>, vector<32x56xf32>,
      %cst_74 = arith.constant 0.000000e+00 : f32
      %83 = vector.broadcast %cst_74 : f32 to vector<32x8xf32>
      %c96_75 = arith.constant 96 : index
      %c56_76 = arith.constant 56 : index
      %84 = vector.load %arg12[%c96_75, %c56_76] : memref<288x64xf32, #tpu.memory_space<vmem>>, vector<32x8xf32>
      tpu.vector_store %arg12[%c96_75, %c56_76], %83 {strides = array<i32>} : memref<288x64xf32, #tpu.memory_space<vmem>>, vector<32x8xf32>,
      %c0_77 = arith.constant 0 : index
      %c9 = arith.constant 9 : index
      %85 = vector.load %arg13[%c0_77, %c9] : memref<32x64xf32, #tpu.memory_space<vmem>>, vector<32x55xf32>
      %c128 = arith.constant 128 : index
      %c0_78 = arith.constant 0 : index
      %86 = vector.load %arg12[%c128, %c0_78] : memref<288x64xf32, #tpu.memory_space<vmem>>, vector<32x55xf32>
      tpu.vector_store %arg12[%c128, %c0_78], %85 {strides = array<i32>} : memref<288x64xf32, #tpu.memory_space<vmem>>, vector<32x55xf32>,
      %cst_79 = arith.constant 0.000000e+00 : f32
      %87 = vector.broadcast %cst_79 : f32 to vector<32x9xf32>
      %c128_80 = arith.constant 128 : index
      %c55_81 = arith.constant 55 : index
      %88 = vector.load %arg12[%c128_80, %c55_81] : memref<288x64xf32, #tpu.memory_space<vmem>>, vector<32x9xf32>
      tpu.vector_store %arg12[%c128_80, %c55_81], %87 {strides = array<i32>} : memref<288x64xf32, #tpu.memory_space<vmem>>, vector<32x9xf32>,
      %c0_82 = arith.constant 0 : index
      %c10 = arith.constant 10 : index
      %89 = vector.load %arg13[%c0_82, %c10] : memref<32x64xf32, #tpu.memory_space<vmem>>, vector<32x54xf32>
      %c160 = arith.constant 160 : index
      %c0_83 = arith.constant 0 : index
      %90 = vector.load %arg12[%c160, %c0_83] : memref<288x64xf32, #tpu.memory_space<vmem>>, vector<32x54xf32>
      tpu.vector_store %arg12[%c160, %c0_83], %89 {strides = array<i32>} : memref<288x64xf32, #tpu.memory_space<vmem>>, vector<32x54xf32>,
      %cst_84 = arith.constant 0.000000e+00 : f32
      %91 = vector.broadcast %cst_84 : f32 to vector<32x10xf32>
      %c160_85 = arith.constant 160 : index
      %c54 = arith.constant 54 : index
      %92 = vector.load %arg12[%c160_85, %c54] : memref<288x64xf32, #tpu.memory_space<vmem>>, vector<32x10xf32>
      tpu.vector_store %arg12[%c160_85, %c54], %91 {strides = array<i32>} : memref<288x64xf32, #tpu.memory_space<vmem>>, vector<32x10xf32>,
      %c0_86 = arith.constant 0 : index
      %c16_87 = arith.constant 16 : index
      %93 = vector.load %arg13[%c0_86, %c16_87] : memref<32x64xf32, #tpu.memory_space<vmem>>, vector<32x48xf32>
      %c192 = arith.constant 192 : index
      %c0_88 = arith.constant 0 : index
      %94 = vector.load %arg12[%c192, %c0_88] : memref<288x64xf32, #tpu.memory_space<vmem>>, vector<32x48xf32>
      tpu.vector_store %arg12[%c192, %c0_88], %93 {strides = array<i32>} : memref<288x64xf32, #tpu.memory_space<vmem>>, vector<32x48xf32>,
      %cst_89 = arith.constant 0.000000e+00 : f32
      %95 = vector.broadcast %cst_89 : f32 to vector<32x16xf32>
      %c192_90 = arith.constant 192 : index
      %c48 = arith.constant 48 : index
      %96 = vector.load %arg12[%c192_90, %c48] : memref<288x64xf32, #tpu.memory_space<vmem>>, vector<32x16xf32>
      tpu.vector_store %arg12[%c192_90, %c48], %95 {strides = array<i32>} : memref<288x64xf32, #tpu.memory_space<vmem>>, vector<32x16xf32>,
      %c0_91 = arith.constant 0 : index
      %c17 = arith.constant 17 : index
      %97 = vector.load %arg13[%c0_91, %c17] : memref<32x64xf32, #tpu.memory_space<vmem>>, vector<32x47xf32>
      %c224 = arith.constant 224 : index
      %c0_92 = arith.constant 0 : index
      %98 = vector.load %arg12[%c224, %c0_92] : memref<288x64xf32, #tpu.memory_space<vmem>>, vector<32x47xf32>
      tpu.vector_store %arg12[%c224, %c0_92], %97 {strides = array<i32>} : memref<288x64xf32, #tpu.memory_space<vmem>>, vector<32x47xf32>,
      %cst_93 = arith.constant 0.000000e+00 : f32
      %99 = vector.broadcast %cst_93 : f32 to vector<32x17xf32>
      %c224_94 = arith.constant 224 : index
      %c47 = arith.constant 47 : index
      %100 = vector.load %arg12[%c224_94, %c47] : memref<288x64xf32, #tpu.memory_space<vmem>>, vector<32x17xf32>
      tpu.vector_store %arg12[%c224_94, %c47], %99 {strides = array<i32>} : memref<288x64xf32, #tpu.memory_space<vmem>>, vector<32x17xf32>,
      %c0_95 = arith.constant 0 : index
      %c18 = arith.constant 18 : index
      %101 = vector.load %arg13[%c0_95, %c18] : memref<32x64xf32, #tpu.memory_space<vmem>>, vector<32x46xf32>
      %c256 = arith.constant 256 : index
      %c0_96 = arith.constant 0 : index
      %102 = vector.load %arg12[%c256, %c0_96] : memref<288x64xf32, #tpu.memory_space<vmem>>, vector<32x46xf32>
      tpu.vector_store %arg12[%c256, %c0_96], %101 {strides = array<i32>} : memref<288x64xf32, #tpu.memory_space<vmem>>, vector<32x46xf32>,
      %cst_97 = arith.constant 0.000000e+00 : f32
      %103 = vector.broadcast %cst_97 : f32 to vector<32x18xf32>
      %c256_98 = arith.constant 256 : index
      %c46 = arith.constant 46 : index
      %104 = vector.load %arg12[%c256_98, %c46] : memref<288x64xf32, #tpu.memory_space<vmem>>, vector<32x18xf32>
      tpu.vector_store %arg12[%c256_98, %c46], %103 {strides = array<i32>} : memref<288x64xf32, #tpu.memory_space<vmem>>, vector<32x18xf32>,
      %c0_99 = arith.constant 0 : index
      %c0_100 = arith.constant 0 : index
      %105 = vector.load %arg4[%c0_99, %c0_100] : memref<32x288xf32, #tpu.memory_space<vmem>>, vector<32x288xf32>
      %c0_101 = arith.constant 0 : index
      %c0_102 = arith.constant 0 : index
      %106 = vector.load %arg5[%c0_101, %c0_102] : memref<32x1xf32, #tpu.memory_space<vmem>>, vector<32x1xf32>
      %c0_103 = arith.constant 0 : index
      %c0_104 = arith.constant 0 : index
      %107 = vector.load %arg12[%c0_103, %c0_104] : memref<288x64xf32, #tpu.memory_space<vmem>>, vector<288x64xf32>
      %cst_105 = arith.constant dense<0.000000e+00> : vector<32x64xf32>
      %108 = tpu.matmul %105, %107, %cst_105 {dimension_numbers = #tpu.dot_dimension_numbers<[1], [0], [0], [1], [0, 0, 1, 1], [], []>} : vector<32x288xf32>, vector<288x64xf32>, vector<32x64xf32> -> vector<32x64xf32>
      %109 = vector.broadcast %106 : vector<32x1xf32> to vector<32x64xf32>
      %110 = arith.addf %108, %109 : vector<32x64xf32>
      %cst_106 = arith.constant 0.000000e+00 : f32
      %111 = vector.broadcast %cst_106 : f32 to vector<32x64xf32>
      %112 = arith.maximumf %110, %111 : vector<32x64xf32>
      %c0_107 = arith.constant 0 : index
      %c0_108 = arith.constant 0 : index
      %113 = vector.load %arg13[%c0_107, %c0_108] : memref<32x64xf32, #tpu.memory_space<vmem>>, vector<32x64xf32>
      tpu.vector_store %arg13[%c0_107, %c0_108], %112 {strides = array<i32>} : memref<32x64xf32, #tpu.memory_space<vmem>>, vector<32x64xf32>,
      %c0_109 = arith.constant 0 : index
      %c0_110 = arith.constant 0 : index
      %114 = vector.load %arg13[%c0_109, %c0_110] : memref<32x64xf32, #tpu.memory_space<vmem>>, vector<32x64xf32>
      %c0_111 = arith.constant 0 : index
      %c0_112 = arith.constant 0 : index
      %115 = vector.load %arg12[%c0_111, %c0_112] : memref<288x64xf32, #tpu.memory_space<vmem>>, vector<32x64xf32>
      tpu.vector_store %arg12[%c0_111, %c0_112], %114 {strides = array<i32>} : memref<288x64xf32, #tpu.memory_space<vmem>>, vector<32x64xf32>,
      %c0_113 = arith.constant 0 : index
      %c1_114 = arith.constant 1 : index
      %116 = vector.load %arg13[%c0_113, %c1_114] : memref<32x64xf32, #tpu.memory_space<vmem>>, vector<32x63xf32>
      %c32_115 = arith.constant 32 : index
      %c0_116 = arith.constant 0 : index
      %117 = vector.load %arg12[%c32_115, %c0_116] : memref<288x64xf32, #tpu.memory_space<vmem>>, vector<32x63xf32>
      tpu.vector_store %arg12[%c32_115, %c0_116], %116 {strides = array<i32>} : memref<288x64xf32, #tpu.memory_space<vmem>>, vector<32x63xf32>,
      %cst_117 = arith.constant 0.000000e+00 : f32
      %118 = vector.broadcast %cst_117 : f32 to vector<32x1xf32>
      %c32_118 = arith.constant 32 : index
      %c63_119 = arith.constant 63 : index
      %119 = vector.load %arg12[%c32_118, %c63_119] : memref<288x64xf32, #tpu.memory_space<vmem>>, vector<32x1xf32>
      tpu.vector_store %arg12[%c32_118, %c63_119], %118 {strides = array<i32>} : memref<288x64xf32, #tpu.memory_space<vmem>>, vector<32x1xf32>,
      %c0_120 = arith.constant 0 : index
      %c2_121 = arith.constant 2 : index
      %120 = vector.load %arg13[%c0_120, %c2_121] : memref<32x64xf32, #tpu.memory_space<vmem>>, vector<32x62xf32>
      %c64_122 = arith.constant 64 : index
      %c0_123 = arith.constant 0 : index
      %121 = vector.load %arg12[%c64_122, %c0_123] : memref<288x64xf32, #tpu.memory_space<vmem>>, vector<32x62xf32>
      tpu.vector_store %arg12[%c64_122, %c0_123], %120 {strides = array<i32>} : memref<288x64xf32, #tpu.memory_space<vmem>>, vector<32x62xf32>,
      %cst_124 = arith.constant 0.000000e+00 : f32
      %122 = vector.broadcast %cst_124 : f32 to vector<32x2xf32>
      %c64_125 = arith.constant 64 : index
      %c62_126 = arith.constant 62 : index
      %123 = vector.load %arg12[%c64_125, %c62_126] : memref<288x64xf32, #tpu.memory_space<vmem>>, vector<32x2xf32>
      tpu.vector_store %arg12[%c64_125, %c62_126], %122 {strides = array<i32>} : memref<288x64xf32, #tpu.memory_space<vmem>>, vector<32x2xf32>,
      %c0_127 = arith.constant 0 : index
      %c8_128 = arith.constant 8 : index
      %124 = vector.load %arg13[%c0_127, %c8_128] : memref<32x64xf32, #tpu.memory_space<vmem>>, vector<32x56xf32>
      %c96_129 = arith.constant 96 : index
      %c0_130 = arith.constant 0 : index
      %125 = vector.load %arg12[%c96_129, %c0_130] : memref<288x64xf32, #tpu.memory_space<vmem>>, vector<32x56xf32>
      tpu.vector_store %arg12[%c96_129, %c0_130], %124 {strides = array<i32>} : memref<288x64xf32, #tpu.memory_space<vmem>>, vector<32x56xf32>,
      %cst_131 = arith.constant 0.000000e+00 : f32
      %126 = vector.broadcast %cst_131 : f32 to vector<32x8xf32>
      %c96_132 = arith.constant 96 : index
      %c56_133 = arith.constant 56 : index
      %127 = vector.load %arg12[%c96_132, %c56_133] : memref<288x64xf32, #tpu.memory_space<vmem>>, vector<32x8xf32>
      tpu.vector_store %arg12[%c96_132, %c56_133], %126 {strides = array<i32>} : memref<288x64xf32, #tpu.memory_space<vmem>>, vector<32x8xf32>,
      %c0_134 = arith.constant 0 : index
      %c9_135 = arith.constant 9 : index
      %128 = vector.load %arg13[%c0_134, %c9_135] : memref<32x64xf32, #tpu.memory_space<vmem>>, vector<32x55xf32>
      %c128_136 = arith.constant 128 : index
      %c0_137 = arith.constant 0 : index
      %129 = vector.load %arg12[%c128_136, %c0_137] : memref<288x64xf32, #tpu.memory_space<vmem>>, vector<32x55xf32>
      tpu.vector_store %arg12[%c128_136, %c0_137], %128 {strides = array<i32>} : memref<288x64xf32, #tpu.memory_space<vmem>>, vector<32x55xf32>,
      %cst_138 = arith.constant 0.000000e+00 : f32
      %130 = vector.broadcast %cst_138 : f32 to vector<32x9xf32>
      %c128_139 = arith.constant 128 : index
      %c55_140 = arith.constant 55 : index
      %131 = vector.load %arg12[%c128_139, %c55_140] : memref<288x64xf32, #tpu.memory_space<vmem>>, vector<32x9xf32>
      tpu.vector_store %arg12[%c128_139, %c55_140], %130 {strides = array<i32>} : memref<288x64xf32, #tpu.memory_space<vmem>>, vector<32x9xf32>,
      %c0_141 = arith.constant 0 : index
      %c10_142 = arith.constant 10 : index
      %132 = vector.load %arg13[%c0_141, %c10_142] : memref<32x64xf32, #tpu.memory_space<vmem>>, vector<32x54xf32>
      %c160_143 = arith.constant 160 : index
      %c0_144 = arith.constant 0 : index
      %133 = vector.load %arg12[%c160_143, %c0_144] : memref<288x64xf32, #tpu.memory_space<vmem>>, vector<32x54xf32>
      tpu.vector_store %arg12[%c160_143, %c0_144], %132 {strides = array<i32>} : memref<288x64xf32, #tpu.memory_space<vmem>>, vector<32x54xf32>,
      %cst_145 = arith.constant 0.000000e+00 : f32
      %134 = vector.broadcast %cst_145 : f32 to vector<32x10xf32>
      %c160_146 = arith.constant 160 : index
      %c54_147 = arith.constant 54 : index
      %135 = vector.load %arg12[%c160_146, %c54_147] : memref<288x64xf32, #tpu.memory_space<vmem>>, vector<32x10xf32>
      tpu.vector_store %arg12[%c160_146, %c54_147], %134 {strides = array<i32>} : memref<288x64xf32, #tpu.memory_space<vmem>>, vector<32x10xf32>,
      %c0_148 = arith.constant 0 : index
      %c16_149 = arith.constant 16 : index
      %136 = vector.load %arg13[%c0_148, %c16_149] : memref<32x64xf32, #tpu.memory_space<vmem>>, vector<32x48xf32>
      %c192_150 = arith.constant 192 : index
      %c0_151 = arith.constant 0 : index
      %137 = vector.load %arg12[%c192_150, %c0_151] : memref<288x64xf32, #tpu.memory_space<vmem>>, vector<32x48xf32>
      tpu.vector_store %arg12[%c192_150, %c0_151], %136 {strides = array<i32>} : memref<288x64xf32, #tpu.memory_space<vmem>>, vector<32x48xf32>,
      %cst_152 = arith.constant 0.000000e+00 : f32
      %138 = vector.broadcast %cst_152 : f32 to vector<32x16xf32>
      %c192_153 = arith.constant 192 : index
      %c48_154 = arith.constant 48 : index
      %139 = vector.load %arg12[%c192_153, %c48_154] : memref<288x64xf32, #tpu.memory_space<vmem>>, vector<32x16xf32>
      tpu.vector_store %arg12[%c192_153, %c48_154], %138 {strides = array<i32>} : memref<288x64xf32, #tpu.memory_space<vmem>>, vector<32x16xf32>,
      %c0_155 = arith.constant 0 : index
      %c17_156 = arith.constant 17 : index
      %140 = vector.load %arg13[%c0_155, %c17_156] : memref<32x64xf32, #tpu.memory_space<vmem>>, vector<32x47xf32>
      %c224_157 = arith.constant 224 : index
      %c0_158 = arith.constant 0 : index
      %141 = vector.load %arg12[%c224_157, %c0_158] : memref<288x64xf32, #tpu.memory_space<vmem>>, vector<32x47xf32>
      tpu.vector_store %arg12[%c224_157, %c0_158], %140 {strides = array<i32>} : memref<288x64xf32, #tpu.memory_space<vmem>>, vector<32x47xf32>,
      %cst_159 = arith.constant 0.000000e+00 : f32
      %142 = vector.broadcast %cst_159 : f32 to vector<32x17xf32>
      %c224_160 = arith.constant 224 : index
      %c47_161 = arith.constant 47 : index
      %143 = vector.load %arg12[%c224_160, %c47_161] : memref<288x64xf32, #tpu.memory_space<vmem>>, vector<32x17xf32>
      tpu.vector_store %arg12[%c224_160, %c47_161], %142 {strides = array<i32>} : memref<288x64xf32, #tpu.memory_space<vmem>>, vector<32x17xf32>,
      %c0_162 = arith.constant 0 : index
      %c18_163 = arith.constant 18 : index
      %144 = vector.load %arg13[%c0_162, %c18_163] : memref<32x64xf32, #tpu.memory_space<vmem>>, vector<32x46xf32>
      %c256_164 = arith.constant 256 : index
      %c0_165 = arith.constant 0 : index
      %145 = vector.load %arg12[%c256_164, %c0_165] : memref<288x64xf32, #tpu.memory_space<vmem>>, vector<32x46xf32>
      tpu.vector_store %arg12[%c256_164, %c0_165], %144 {strides = array<i32>} : memref<288x64xf32, #tpu.memory_space<vmem>>, vector<32x46xf32>,
      %cst_166 = arith.constant 0.000000e+00 : f32
      %146 = vector.broadcast %cst_166 : f32 to vector<32x18xf32>
      %c256_167 = arith.constant 256 : index
      %c46_168 = arith.constant 46 : index
      %147 = vector.load %arg12[%c256_167, %c46_168] : memref<288x64xf32, #tpu.memory_space<vmem>>, vector<32x18xf32>
      tpu.vector_store %arg12[%c256_167, %c46_168], %146 {strides = array<i32>} : memref<288x64xf32, #tpu.memory_space<vmem>>, vector<32x18xf32>,
      %c0_169 = arith.constant 0 : index
      %c0_170 = arith.constant 0 : index
      %148 = vector.load %arg6[%c0_169, %c0_170] : memref<32x288xf32, #tpu.memory_space<vmem>>, vector<32x288xf32>
      %c0_171 = arith.constant 0 : index
      %c0_172 = arith.constant 0 : index
      %149 = vector.load %arg7[%c0_171, %c0_172] : memref<32x1xf32, #tpu.memory_space<vmem>>, vector<32x1xf32>
      %c0_173 = arith.constant 0 : index
      %c0_174 = arith.constant 0 : index
      %150 = vector.load %arg12[%c0_173, %c0_174] : memref<288x64xf32, #tpu.memory_space<vmem>>, vector<288x64xf32>
      %cst_175 = arith.constant dense<0.000000e+00> : vector<32x64xf32>
      %151 = tpu.matmul %148, %150, %cst_175 {dimension_numbers = #tpu.dot_dimension_numbers<[1], [0], [0], [1], [0, 0, 1, 1], [], []>} : vector<32x288xf32>, vector<288x64xf32>, vector<32x64xf32> -> vector<32x64xf32>
      %152 = vector.broadcast %149 : vector<32x1xf32> to vector<32x64xf32>
      %153 = arith.addf %151, %152 : vector<32x64xf32>
      %cst_176 = arith.constant 0.000000e+00 : f32
      %154 = vector.broadcast %cst_176 : f32 to vector<32x64xf32>
      %155 = arith.maximumf %153, %154 : vector<32x64xf32>
      %c0_177 = arith.constant 0 : index
      %c0_178 = arith.constant 0 : index
      %156 = vector.load %arg13[%c0_177, %c0_178] : memref<32x64xf32, #tpu.memory_space<vmem>>, vector<32x64xf32>
      tpu.vector_store %arg13[%c0_177, %c0_178], %155 {strides = array<i32>} : memref<32x64xf32, #tpu.memory_space<vmem>>, vector<32x64xf32>,
      %c0_179 = arith.constant 0 : index
      %c0_180 = arith.constant 0 : index
      %157 = vector.load %arg13[%c0_179, %c0_180] : memref<32x64xf32, #tpu.memory_space<vmem>>, vector<32x64xf32>
      %c0_181 = arith.constant 0 : index
      %c0_182 = arith.constant 0 : index
      %158 = vector.load %arg12[%c0_181, %c0_182] : memref<288x64xf32, #tpu.memory_space<vmem>>, vector<32x64xf32>
      tpu.vector_store %arg12[%c0_181, %c0_182], %157 {strides = array<i32>} : memref<288x64xf32, #tpu.memory_space<vmem>>, vector<32x64xf32>,
      %c0_183 = arith.constant 0 : index
      %c1_184 = arith.constant 1 : index
      %159 = vector.load %arg13[%c0_183, %c1_184] : memref<32x64xf32, #tpu.memory_space<vmem>>, vector<32x63xf32>
      %c32_185 = arith.constant 32 : index
      %c0_186 = arith.constant 0 : index
      %160 = vector.load %arg12[%c32_185, %c0_186] : memref<288x64xf32, #tpu.memory_space<vmem>>, vector<32x63xf32>
      tpu.vector_store %arg12[%c32_185, %c0_186], %159 {strides = array<i32>} : memref<288x64xf32, #tpu.memory_space<vmem>>, vector<32x63xf32>,
      %cst_187 = arith.constant 0.000000e+00 : f32
      %161 = vector.broadcast %cst_187 : f32 to vector<32x1xf32>
      %c32_188 = arith.constant 32 : index
      %c63_189 = arith.constant 63 : index
      %162 = vector.load %arg12[%c32_188, %c63_189] : memref<288x64xf32, #tpu.memory_space<vmem>>, vector<32x1xf32>
      tpu.vector_store %arg12[%c32_188, %c63_189], %161 {strides = array<i32>} : memref<288x64xf32, #tpu.memory_space<vmem>>, vector<32x1xf32>,
      %c0_190 = arith.constant 0 : index
      %c2_191 = arith.constant 2 : index
      %163 = vector.load %arg13[%c0_190, %c2_191] : memref<32x64xf32, #tpu.memory_space<vmem>>, vector<32x62xf32>
      %c64_192 = arith.constant 64 : index
      %c0_193 = arith.constant 0 : index
      %164 = vector.load %arg12[%c64_192, %c0_193] : memref<288x64xf32, #tpu.memory_space<vmem>>, vector<32x62xf32>
      tpu.vector_store %arg12[%c64_192, %c0_193], %163 {strides = array<i32>} : memref<288x64xf32, #tpu.memory_space<vmem>>, vector<32x62xf32>,
      %cst_194 = arith.constant 0.000000e+00 : f32
      %165 = vector.broadcast %cst_194 : f32 to vector<32x2xf32>
      %c64_195 = arith.constant 64 : index
      %c62_196 = arith.constant 62 : index
      %166 = vector.load %arg12[%c64_195, %c62_196] : memref<288x64xf32, #tpu.memory_space<vmem>>, vector<32x2xf32>
      tpu.vector_store %arg12[%c64_195, %c62_196], %165 {strides = array<i32>} : memref<288x64xf32, #tpu.memory_space<vmem>>, vector<32x2xf32>,
      %c0_197 = arith.constant 0 : index
      %c8_198 = arith.constant 8 : index
      %167 = vector.load %arg13[%c0_197, %c8_198] : memref<32x64xf32, #tpu.memory_space<vmem>>, vector<32x56xf32>
      %c96_199 = arith.constant 96 : index
      %c0_200 = arith.constant 0 : index
      %168 = vector.load %arg12[%c96_199, %c0_200] : memref<288x64xf32, #tpu.memory_space<vmem>>, vector<32x56xf32>
      tpu.vector_store %arg12[%c96_199, %c0_200], %167 {strides = array<i32>} : memref<288x64xf32, #tpu.memory_space<vmem>>, vector<32x56xf32>,
      %cst_201 = arith.constant 0.000000e+00 : f32
      %169 = vector.broadcast %cst_201 : f32 to vector<32x8xf32>
      %c96_202 = arith.constant 96 : index
      %c56_203 = arith.constant 56 : index
      %170 = vector.load %arg12[%c96_202, %c56_203] : memref<288x64xf32, #tpu.memory_space<vmem>>, vector<32x8xf32>
      tpu.vector_store %arg12[%c96_202, %c56_203], %169 {strides = array<i32>} : memref<288x64xf32, #tpu.memory_space<vmem>>, vector<32x8xf32>,
      %c0_204 = arith.constant 0 : index
      %c9_205 = arith.constant 9 : index
      %171 = vector.load %arg13[%c0_204, %c9_205] : memref<32x64xf32, #tpu.memory_space<vmem>>, vector<32x55xf32>
      %c128_206 = arith.constant 128 : index
      %c0_207 = arith.constant 0 : index
      %172 = vector.load %arg12[%c128_206, %c0_207] : memref<288x64xf32, #tpu.memory_space<vmem>>, vector<32x55xf32>
      tpu.vector_store %arg12[%c128_206, %c0_207], %171 {strides = array<i32>} : memref<288x64xf32, #tpu.memory_space<vmem>>, vector<32x55xf32>,
      %cst_208 = arith.constant 0.000000e+00 : f32
      %173 = vector.broadcast %cst_208 : f32 to vector<32x9xf32>
      %c128_209 = arith.constant 128 : index
      %c55_210 = arith.constant 55 : index
      %174 = vector.load %arg12[%c128_209, %c55_210] : memref<288x64xf32, #tpu.memory_space<vmem>>, vector<32x9xf32>
      tpu.vector_store %arg12[%c128_209, %c55_210], %173 {strides = array<i32>} : memref<288x64xf32, #tpu.memory_space<vmem>>, vector<32x9xf32>,
      %c0_211 = arith.constant 0 : index
      %c10_212 = arith.constant 10 : index
      %175 = vector.load %arg13[%c0_211, %c10_212] : memref<32x64xf32, #tpu.memory_space<vmem>>, vector<32x54xf32>
      %c160_213 = arith.constant 160 : index
      %c0_214 = arith.constant 0 : index
      %176 = vector.load %arg12[%c160_213, %c0_214] : memref<288x64xf32, #tpu.memory_space<vmem>>, vector<32x54xf32>
      tpu.vector_store %arg12[%c160_213, %c0_214], %175 {strides = array<i32>} : memref<288x64xf32, #tpu.memory_space<vmem>>, vector<32x54xf32>,
      %cst_215 = arith.constant 0.000000e+00 : f32
      %177 = vector.broadcast %cst_215 : f32 to vector<32x10xf32>
      %c160_216 = arith.constant 160 : index
      %c54_217 = arith.constant 54 : index
      %178 = vector.load %arg12[%c160_216, %c54_217] : memref<288x64xf32, #tpu.memory_space<vmem>>, vector<32x10xf32>
      tpu.vector_store %arg12[%c160_216, %c54_217], %177 {strides = array<i32>} : memref<288x64xf32, #tpu.memory_space<vmem>>, vector<32x10xf32>,
      %c0_218 = arith.constant 0 : index
      %c16_219 = arith.constant 16 : index
      %179 = vector.load %arg13[%c0_218, %c16_219] : memref<32x64xf32, #tpu.memory_space<vmem>>, vector<32x48xf32>
      %c192_220 = arith.constant 192 : index
      %c0_221 = arith.constant 0 : index
      %180 = vector.load %arg12[%c192_220, %c0_221] : memref<288x64xf32, #tpu.memory_space<vmem>>, vector<32x48xf32>
      tpu.vector_store %arg12[%c192_220, %c0_221], %179 {strides = array<i32>} : memref<288x64xf32, #tpu.memory_space<vmem>>, vector<32x48xf32>,
      %cst_222 = arith.constant 0.000000e+00 : f32
      %181 = vector.broadcast %cst_222 : f32 to vector<32x16xf32>
      %c192_223 = arith.constant 192 : index
      %c48_224 = arith.constant 48 : index
      %182 = vector.load %arg12[%c192_223, %c48_224] : memref<288x64xf32, #tpu.memory_space<vmem>>, vector<32x16xf32>
      tpu.vector_store %arg12[%c192_223, %c48_224], %181 {strides = array<i32>} : memref<288x64xf32, #tpu.memory_space<vmem>>, vector<32x16xf32>,
      %c0_225 = arith.constant 0 : index
      %c17_226 = arith.constant 17 : index
      %183 = vector.load %arg13[%c0_225, %c17_226] : memref<32x64xf32, #tpu.memory_space<vmem>>, vector<32x47xf32>
      %c224_227 = arith.constant 224 : index
      %c0_228 = arith.constant 0 : index
      %184 = vector.load %arg12[%c224_227, %c0_228] : memref<288x64xf32, #tpu.memory_space<vmem>>, vector<32x47xf32>
      tpu.vector_store %arg12[%c224_227, %c0_228], %183 {strides = array<i32>} : memref<288x64xf32, #tpu.memory_space<vmem>>, vector<32x47xf32>,
      %cst_229 = arith.constant 0.000000e+00 : f32
      %185 = vector.broadcast %cst_229 : f32 to vector<32x17xf32>
      %c224_230 = arith.constant 224 : index
      %c47_231 = arith.constant 47 : index
      %186 = vector.load %arg12[%c224_230, %c47_231] : memref<288x64xf32, #tpu.memory_space<vmem>>, vector<32x17xf32>
      tpu.vector_store %arg12[%c224_230, %c47_231], %185 {strides = array<i32>} : memref<288x64xf32, #tpu.memory_space<vmem>>, vector<32x17xf32>,
      %c0_232 = arith.constant 0 : index
      %c18_233 = arith.constant 18 : index
      %187 = vector.load %arg13[%c0_232, %c18_233] : memref<32x64xf32, #tpu.memory_space<vmem>>, vector<32x46xf32>
      %c256_234 = arith.constant 256 : index
      %c0_235 = arith.constant 0 : index
      %188 = vector.load %arg12[%c256_234, %c0_235] : memref<288x64xf32, #tpu.memory_space<vmem>>, vector<32x46xf32>
      tpu.vector_store %arg12[%c256_234, %c0_235], %187 {strides = array<i32>} : memref<288x64xf32, #tpu.memory_space<vmem>>, vector<32x46xf32>,
      %cst_236 = arith.constant 0.000000e+00 : f32
      %189 = vector.broadcast %cst_236 : f32 to vector<32x18xf32>
      %c256_237 = arith.constant 256 : index
      %c46_238 = arith.constant 46 : index
      %190 = vector.load %arg12[%c256_237, %c46_238] : memref<288x64xf32, #tpu.memory_space<vmem>>, vector<32x18xf32>
      tpu.vector_store %arg12[%c256_237, %c46_238], %189 {strides = array<i32>} : memref<288x64xf32, #tpu.memory_space<vmem>>, vector<32x18xf32>,
      %c0_239 = arith.constant 0 : index
      %c0_240 = arith.constant 0 : index
      %191 = vector.load %arg8[%c0_239, %c0_240] : memref<32x288xf32, #tpu.memory_space<vmem>>, vector<32x288xf32>
      %c0_241 = arith.constant 0 : index
      %c0_242 = arith.constant 0 : index
      %192 = vector.load %arg9[%c0_241, %c0_242] : memref<32x1xf32, #tpu.memory_space<vmem>>, vector<32x1xf32>
      %c0_243 = arith.constant 0 : index
      %c0_244 = arith.constant 0 : index
      %193 = vector.load %arg12[%c0_243, %c0_244] : memref<288x64xf32, #tpu.memory_space<vmem>>, vector<288x64xf32>
      %cst_245 = arith.constant dense<0.000000e+00> : vector<32x64xf32>
      %194 = tpu.matmul %191, %193, %cst_245 {dimension_numbers = #tpu.dot_dimension_numbers<[1], [0], [0], [1], [0, 0, 1, 1], [], []>} : vector<32x288xf32>, vector<288x64xf32>, vector<32x64xf32> -> vector<32x64xf32>
      %195 = vector.broadcast %192 : vector<32x1xf32> to vector<32x64xf32>
      %196 = arith.addf %194, %195 : vector<32x64xf32>
      %cst_246 = arith.constant 0.000000e+00 : f32
      %197 = vector.broadcast %cst_246 : f32 to vector<32x64xf32>
      %198 = arith.maximumf %196, %197 : vector<32x64xf32>
      %199 = arith.index_cast %arg14 : i32 to index
      %c0_247 = arith.constant 0 : index
      %c0_248 = arith.constant 0 : index
      %200 = vector.load %arg10[%199, %c0_247, %c0_248] : memref<2x32x64xf32, #tpu.memory_space<vmem>>, vector<1x32x64xf32>
      %201 = vector.shape_cast %200 : vector<1x32x64xf32> to vector<32x64xf32>
      %202 = vector.shape_cast %198 : vector<32x64xf32> to vector<1x32x64xf32>
      tpu.vector_store %arg10[%199, %c0_247, %c0_248], %202 {strides = array<i32>} : memref<2x32x64xf32, #tpu.memory_space<vmem>>, vector<1x32x64xf32>,
    }
    %c2_i32_0 = arith.constant 2 : i32
    return
  }
  func.func @transform_0(%arg0: i32) -> (i32, i32, i32) {
    %c0_i32 = arith.constant 0 : i32
    %c0_i32_0 = arith.constant 0 : i32
    %c0_i32_1 = arith.constant 0 : i32
    return %arg0, %c0_i32, %c0_i32_0 : i32, i32, i32
  }
  func.func @transform_1(%arg0: i32) -> (i32, i32) {
    %c0_i32 = arith.constant 0 : i32
    %c0_i32_0 = arith.constant 0 : i32
    %c0_i32_1 = arith.constant 0 : i32
    return %c0_i32, %c0_i32_0 : i32, i32
  }
  func.func @transform_2(%arg0: i32) -> (i32, i32) {
    %c0_i32 = arith.constant 0 : i32
    %c0_i32_0 = arith.constant 0 : i32
    %c0_i32_1 = arith.constant 0 : i32
    return %c0_i32, %c0_i32_0 : i32, i32
  }
  func.func @transform_3(%arg0: i32) -> (i32, i32) {
    %c0_i32 = arith.constant 0 : i32
    %c0_i32_0 = arith.constant 0 : i32
    %c0_i32_1 = arith.constant 0 : i32
    return %c0_i32, %c0_i32_0 : i32, i32
  }
  func.func @transform_4(%arg0: i32) -> (i32, i32) {
    %c0_i32 = arith.constant 0 : i32
    %c0_i32_0 = arith.constant 0 : i32
    %c0_i32_1 = arith.constant 0 : i32
    return %c0_i32, %c0_i32_0 : i32, i32
  }
  func.func @transform_5(%arg0: i32) -> (i32, i32) {
    %c0_i32 = arith.constant 0 : i32
    %c0_i32_0 = arith.constant 0 : i32
    %c0_i32_1 = arith.constant 0 : i32
    return %c0_i32, %c0_i32_0 : i32, i32
  }
  func.func @transform_6(%arg0: i32) -> (i32, i32) {
    %c0_i32 = arith.constant 0 : i32
    %c0_i32_0 = arith.constant 0 : i32
    %c0_i32_1 = arith.constant 0 : i32
    return %c0_i32, %c0_i32_0 : i32, i32
  }
  func.func @transform_7(%arg0: i32) -> (i32, i32) {
    %c0_i32 = arith.constant 0 : i32
    %c0_i32_0 = arith.constant 0 : i32
    %c0_i32_1 = arith.constant 0 : i32
    return %c0_i32, %c0_i32_0 : i32, i32
  }
  func.func @transform_8(%arg0: i32) -> (i32, i32) {
    %c0_i32 = arith.constant 0 : i32
    %c0_i32_0 = arith.constant 0 : i32
    %c0_i32_1 = arith.constant 0 : i32
    return %c0_i32, %c0_i32_0 : i32, i32
  }
  func.func @transform_9(%arg0: i32) -> (i32, i32, i32) {
    %c0_i32 = arith.constant 0 : i32
    %c0_i32_0 = arith.constant 0 : i32
    %c0_i32_1 = arith.constant 0 : i32
    return %arg0, %c0_i32, %c0_i32_0 : i32, i32, i32
  }
}

</mosaic_0001>

<bundles_post_ra>
// kernel: encoder_forward.1
= control target key start
LH: loop header
LB: loop body
LE: loop exit
PB: predicated region body
PF: predicated region fallthrough
CT: control target
= control target key end

     0   :  { %s1589_s30 = smov 0   ;;  %s2211_s0 = inlined_call_operand.vmem [shape: f32[8,4,64], index: 0, kind: input, shape index: {}]   ;;  %s2212_s1 = inlined_call_operand.vmem [shape: f32[32,36], index: 1, kind: input, shape index: {}]   ;;  %s2213_s2 = inlined_call_operand.vmem [shape: f32[32,1], index: 2, kind: input, shape index: {}]   ;;  %s2214_s3 = inlined_call_operand.vmem [shape: f32[32,288], index: 3, kind: input, shape index: {}]   ;;  %s2215_s4 = inlined_call_operand.vmem [shape: f32[32,1], index: 4, kind: input, shape index: {}]   ;;  %s2216_s5 = inlined_call_operand.vmem [shape: f32[32,288], index: 5, kind: input, shape index: {}]   ;;  %s2217_s6 = inlined_call_operand.vmem [shape: f32[32,1], index: 6, kind: input, shape index: {}]   ;;  %s2218_s7 = inlined_call_operand.vmem [shape: f32[32,288], index: 7, kind: input, shape index: {}]   ;;  %s2219_s8 = inlined_call_operand.vmem [shape: f32[32,1], index: 8, kind: input, shape index: {}]   ;;  %s2220_s9 = inlined_call_operand.vmem [shape: f32[2,32,64], index: 9, kind: output, shape index: {}]  }
   0x1 LB: > { %s1496_s10 = sshll.u32 %s1527_s30, 4  ;;  %s1529_s14 = smov 119   ;;  %vm42_vm0 = vcmask 519168   ;;  %vm54_vm1 = vcmask 510976   ;;  %vm56_vm2 = vcmask 519672   ;;  %v1532_v8 = vmov 0.0   ;;  %s1527_s30 = sphi %s1589_s30, %s37_s30  }
   0x2   : > { %s40_s13 = scalar_lea.vmem %s2211_s0, %s1496_s10  ;;  %s1530_s15 = smov 120   ;;  %vm96_vm3 = vcmask 445440   ;;  %vm98_vm4 = vcmask 519608   ;;  %vm80_vm5 = vcmask 453632   ;;  %vm82_vm6 = vcmask 519616   ;;  %v105_v16 = vld [vmem:[%s2213_s2 + $0x8] sm:$0xff] }
   0x3   : > { %v91_v0 = vld [vmem:[%s40_s13] sm:$0xf]  ;;  %v1477_v1 = vld [vmem:[%s40_s13 + $0x4] sm:$0xf]  ;;  %s1531_s16 = smov 127   ;;  %vm146_vm7 = vcmask 1043456  }
   0x4   : > { %93 = vrot.lane.b32.xlu0 %v91_v0, %s1529_s14  ;;  %86 = vrot.lane.b32.xlu1 %v1477_v1, %s1530_s15  ;;  %v49_v2 = vld [vmem:[%s40_s13] sm:$0xf]  ;;  %v1476_v4 = vld [vmem:[%s40_s13 + $0x8] sm:$0xf]  ;;  %v1533_v17 = vmov 0   ;;  %vm133_vm8 = vcmask 293888  }
   0x5   : > { %51 = vrot.lane.b32.xlu2 %v49_v2, %s1531_s16  ;;  %v75_v3 = vld [vmem:[%s40_s13] sm:$0xf]  ;;  %v1475_v5 = vld [vmem:[%s40_s13 + $0xc] sm:$0xf]  ;;  %v1472_v7 = vld [vmem:[%s40_s13 + $0x8] sm:$0xf]  ;;  %1520 = vset.pattern.permute.xlu1 %v1533_v17 }
   0x6   : > { %67 = vst.msk [vmem:[#allocation2 + $0x10] sm:$0xf] %vm42_vm0, %v1475_v5  ;;  %v41_v9 = vld [vmem:[%s40_s13] sm:$0xf]  ;;  %v1469_v10 = vld [vmem:[%s40_s13 + $0x4] sm:$0xf]  ;;  %1518 = vset.pattern.permute.xlu2 %v1533_v17  ;;  %1519 = vset.pattern.permute.xlu0 %v1533_v17 }
   0x7   : > { %62 = vst.msk [vmem:[#allocation2 + $0xc] sm:$0xf] %vm42_vm0, %v1472_v7  ;;  %v107_v19 = vld [vmem:[%s2213_s2 + $0x18] sm:$0xff]  ;;  %v106_v20 = vld [vmem:[%s2213_s2 + $0x10] sm:$0xff]  ;;  %v100_v24 = vld [vmem:[%s2212_s1] sm:$0xff]  ;;  %vm2223_vm9 = vcmask 523264  }
   0x8   : > { %43 = vst.msk [vmem:[#allocation2] sm:$0xf] %vm42_vm0, %v41_v9  ;;  %v104_v25 = vld [vmem:[%s2213_s2] sm:$0xff]  ;;  %v101_v26 = vld [vmem:[%s2212_s1 + $0x8] sm:$0xff]  ;;  %v102_v27 = vld [vmem:[%s2212_s1 + $0x10] sm:$0xff]  ;;  %s1534_s13 = smov 111  }
   0x9   : > { %48 = vst.msk [vmem:[#allocation2 + $0x4] sm:$0xf] %vm42_vm0, %v1469_v10  ;;  %v103_v28 = vld [vmem:[%s2212_s1 + $0x18] sm:$0xff]  ;;  %s1535_s17 = smov 112   ;;  %s1536_s18 = smov 126   ;;  %v448_v50 = vld [vmem:[%s2215_s4] sm:$0xff] }
   0xa   : > { %s1537_s19 = smov 118   ;;  %s1538_s20 = smov 110   ;;  %v451_v49 = vld [vmem:[%s2215_s4 + $0x18] sm:$0xff]  ;;  %v449_v51 = vld [vmem:[%s2215_s4 + $0x8] sm:$0xff]  ;;  %vm366_vm10 = vcmask 392192   ;;  %vm371_vm11 = vcmask 523648  }
   0xb   : > { %v450_v53 = vld [vmem:[%s2215_s4 + $0x10] sm:$0xff]  ;;  %vm246_vm12 = vcmask 506880   ;;  %vm251_vm13 = vcmask 523760   ;;  %vm336_vm14 = vcmask 441344   ;;  %vm341_vm15 = vcmask 523696   ;;  %s1495_s29 = sshll.u32 %s1527_s30, 5 }
   0xc   : > { %77 = vrot.lane.b32.xlu0 %v75_v3, %s1530_s15  ;;  %70 = vrot.lane.b32.xlu1 %v1476_v4, %s1531_s16  ;;  %vm396_vm0 = vcmask 384000   ;;  %s1435_s12 = scalar_lea.vmem %s2220_s9, %s1495_s29  ;;  %s37_s30 = sadd.s32 1, %s1527_s30  }
   0xd   : > { %130 = vperm.xlu2 %1518, %v107_v19   ;;  %p34_p0 = scmp.ge.s32.totalorder %s37_s30, 2  }
  0x10   : > { %v108_v23 = vld [vmem:[#allocation2] sm:$0xff] }
  0x14   : > { %120 = vperm.xlu1 %1520, %v105_v16   ;;  %125 = vperm.xlu0 %1519, %v106_v20  }
  0x15   : > { %115 = vperm.xlu2 %1518, %v104_v25  }
  0x5f   : > { %v52_v6 = vpop.permute.xlu2 %51 }
  0x60   : > { %55 = vst.msk [vmem:[#allocation2 + $0x8] sm:$0xf] %vm54_vm1, %v52_v6 }
  0x61   : > { %57 = vst.msk [vmem:[#allocation2 + $0x8] sm:$0xf] %vm56_vm2, %v1532_v8 }
  0x67   : > { %v131_v29 = vpop.permute.xlu2 %130 }
  0x68   : > { %v109_v22 = vld [vmem:[#allocation2 + $0x8] sm:$0xff] }
  0x6f   : > { %v116_v30 = vpop.permute.xlu2 %115 }
  0x76   : > { %v94_v11 = vpop.permute.xlu0 %93  ;;  %v87_v12 = vpop.permute.xlu1 %86 }
  0x77   : > { %97 = vst.msk [vmem:[#allocation2 + $0x20] sm:$0xf] %vm96_vm3, %v94_v11  ;;  %vm2221_vm3 = vcmask 523712  }
  0x78   : > { %99 = vst.msk [vmem:[#allocation2 + $0x20] sm:$0xf] %vm98_vm4, %v1532_v8  ;;  %vm216_vm4 = vcmask 515072  }
  0x79   : > { %89 = vst.msk [vmem:[#allocation2 + $0x1c] sm:$0xf] %vm80_vm5, %v87_v12 }
  0x7a   : > { %90 = vst.msk [vmem:[#allocation2 + $0x1c] sm:$0xf] %vm82_vm6, %v1532_v8 }
  0x7e   : > { %v78_v13 = vpop.permute.xlu0 %77  ;;  %v71_v14 = vpop.permute.xlu1 %70 }
  0x7f   : > { %81 = vst.msk [vmem:[#allocation2 + $0x18] sm:$0xf] %vm80_vm5, %v78_v13  ;;  %v112_v15 = vld [vmem:[#allocation2 + $0x20] sm:$0xf]  ;;  %vm221_vm5 = vcmask 523768  }
  0x80   : > { %83 = vst.msk [vmem:[#allocation2 + $0x18] sm:$0xf] %vm82_vm6, %v1532_v8  ;;  %1478 = vmatpush.msk.msra.mxu0 %vm146_vm7, %v112_v15  ;;  %vm306_vm6 = vcmask 449536   ;;  %vm311_vm7 = vcmask 523704  }
  0x81   : > { %73 = vst.msk [vmem:[#allocation2 + $0x14] sm:$0xf] %vm54_vm1, %v71_v14  ;;  %vm401_vm1 = vcmask 523640  }
  0x82   : > { %74 = vst.msk [vmem:[#allocation2 + $0x14] sm:$0xf] %vm56_vm2, %v1532_v8  ;;  %vm276_vm2 = vcmask 457728  }
  0x86   : > { %v121_v34 = vpop.permute.xlu1 %120  ;;  %v126_v39 = vpop.permute.xlu0 %125 }
  0x87   : > { %v111_v18 = vld [vmem:[#allocation2 + $0x18] sm:$0xff] }
  0x88   : > { %162 = vmatpush.msra.mxu0 %v111_v18 }
  0x89   : > { %v110_v21 = vld [vmem:[#allocation2 + $0x10] sm:$0xff] }
  0x8a   : > { %163 = vmatpush.msra.mxu0 %v110_v21 }
  0x8c   : > { %164 = vmatpush.msra.mxu0 %v109_v22 }
  0x8e   : > { %165 = vmatpush.msra.mxu0 %v108_v23 }
  0x8f   : > { %1479 = vmatmul.msk.f32.vlgmr.msra.gmra.mxu0 %vm133_vm8, %v100_v24 }
  0x97   : > { %1480 = vmatmul.msk.f32.gmra.mxu0 %vm133_vm8, %v101_v26 }
  0x9f   : > { %1481 = vmatmul.msk.f32.gmra.mxu0 %vm133_vm8, %v102_v27 }
  0xa7   : > { %1482 = vmatmul.msk.f32.gmra.mxu0 %vm133_vm8, %v103_v28  ;;  %vm2225_vm8 = vcmask 375808  }
 0x10c   : > { %v167_v31 = vpop.f32.mrf.mxu0 }
 0x10d   : > { %v168_v32 = vadd.f32 %v167_v31, %v116_v30 }
 0x10f   : > { %v179_v33 = vmax.f32 %v168_v32, 0.0 }
 0x111   : > { %184 = vst.msk [vmem:[#allocation4] sm:$0xff] %vm2223_vm9, %v179_v33 }
 0x114   : > { %v170_v35 = vpop.f32.mrf.mxu0 }
 0x115   : > { %v171_v36 = vadd.f32 %v170_v35, %v121_v34 }
 0x117   : > { %v180_v37 = vmax.f32 %v171_v36, 0.0 }
 0x118   : > { %v376_v38 = vld [vmem:[#allocation4] sm:$0xff] }
 0x119   : > { %185 = vst.msk [vmem:[#allocation4 + $0x8] sm:$0xff] %vm2223_vm9, %v180_v37  ;;  %384 = vrot.lane.b32.xlu0 %v376_v38, %s1534_s13  ;;  %354 = vrot.lane.b32.xlu2 %v376_v38, %s1535_s17 }
 0x11a   : > { %192 = vst.msk [vmem:[#allocation3] sm:$0xff] %vm2223_vm9, %v376_v38 }
 0x11c   : > { %v173_v40 = vpop.f32.mrf.mxu0 }
 0x11d   : > { %v174_v41 = vadd.f32 %v173_v40, %v126_v39 }
 0x11f   : > { %v181_v42 = vmax.f32 %v174_v41, 0.0 }
 0x120   : > { %v377_v43 = vld [vmem:[#allocation4 + $0x8] sm:$0xff] }
 0x121   : > { %386 = vrot.lane.b32.xlu1 %v377_v43, %s1534_s13  ;;  %264 = vrot.lane.b32.xlu0 %v376_v38, %s1530_s15  ;;  %186 = vst.msk [vmem:[#allocation4 + $0x10] sm:$0xff] %vm2223_vm9, %v181_v42 }
 0x122   : > { %234 = vrot.lane.b32.xlu2 %v376_v38, %s1536_s18  ;;  %193 = vst.msk [vmem:[#allocation3 + $0x8] sm:$0xff] %vm2223_vm9, %v377_v43 }
 0x124   : > { %v176_v44 = vpop.f32.mrf.mxu0 }
 0x125   : > { %v177_v45 = vadd.f32 %v176_v44, %v131_v29 }
 0x127   : > { %v182_v46 = vmax.f32 %v177_v45, 0.0 }
 0x128   : > { %v348_v47 = vld [vmem:[#allocation4 + $0x10] sm:$0xff] }
 0x129   : > { %187 = vst.msk [vmem:[#allocation4 + $0x18] sm:$0xff] %vm2223_vm9, %v182_v46  ;;  %266 = vrot.lane.b32.xlu1 %v377_v43, %s1530_s15  ;;  %356 = vrot.lane.b32.xlu0 %v377_v43, %s1535_s17 }
 0x12a   : > { %326 = vrot.lane.b32.xlu2 %v377_v43, %s1537_s19  ;;  %194 = vst.msk [vmem:[#allocation3 + $0x10] sm:$0xff] %vm2223_vm9, %v348_v47 }
 0x130   : > { %v379_v48 = vld [vmem:[#allocation4 + $0x18] sm:$0xff] }
 0x131   : > { %358 = vrot.lane.b32.xlu1 %v348_v47, %s1535_s17  ;;  %236 = vrot.lane.b32.xlu0 %v377_v43, %s1536_s18  ;;  %195 = vst.msk [vmem:[#allocation3 + $0x18] sm:$0xff] %vm2223_vm9, %v379_v48 }
 0x132   : > { %388 = vrot.lane.b32.xlu2 %v348_v47, %s1534_s13 }
 0x139   : > { %238 = vrot.lane.b32.xlu1 %v348_v47, %s1536_s18  ;;  %328 = vrot.lane.b32.xlu0 %v348_v47, %s1537_s19 }
 0x13a   : > { %268 = vrot.lane.b32.xlu2 %v348_v47, %s1530_s15 }
 0x141   : > { %390 = vrot.lane.b32.xlu1 %v379_v48, %s1534_s13  ;;  %270 = vrot.lane.b32.xlu0 %v379_v48, %s1530_s15 }
 0x142   : > { %206 = vrot.lane.b32.xlu2 %v377_v43, %s1531_s16 }
 0x149   : > { %324 = vrot.lane.b32.xlu1 %v376_v38, %s1537_s19  ;;  %208 = vrot.lane.b32.xlu0 %v348_v47, %s1531_s16 }
 0x14a   : > { %360 = vrot.lane.b32.xlu2 %v379_v48, %s1535_s17 }
 0x151   : > { %300 = vrot.lane.b32.xlu0 %v379_v48, %s1529_s14  ;;  %204 = vrot.lane.b32.xlu1 %v376_v38, %s1531_s16 }
 0x152   : > { %240 = vrot.lane.b32.xlu2 %v379_v48, %s1536_s18 }
 0x159   : > { %420 = vrot.lane.b32.xlu0 %v379_v48, %s1538_s20  ;;  %330 = vrot.lane.b32.xlu1 %v379_v48, %s1537_s19 }
 0x15a   : > { %298 = vrot.lane.b32.xlu2 %v348_v47, %s1529_s14 }
 0x161   : > { %294 = vrot.lane.b32.xlu0 %v376_v38, %s1529_s14  ;;  %210 = vrot.lane.b32.xlu1 %v379_v48, %s1531_s16 }
 0x162   : > { %418 = vrot.lane.b32.xlu2 %v348_v47, %s1538_s20 }
 0x169   : > { %505 = vperm.xlu0 %1519, %v451_v49   ;;  %296 = vrot.lane.b32.xlu1 %v377_v43, %s1529_s14 }
 0x16a   : > { %414 = vrot.lane.b32.xlu2 %v376_v38, %s1538_s20 }
 0x171   : > { %490 = vperm.xlu0 %1519, %v448_v50   ;;  %416 = vrot.lane.b32.xlu1 %v377_v43, %s1538_s20 }
 0x172   : > { %495 = vperm.xlu2 %1518, %v449_v51  }
 0x173   : > { %v355_v52 = vpop.permute.xlu2 %354 }
 0x174   : > { %367 = vst.msk [vmem:[#allocation3 + $0xc0] sm:$0xff] %vm366_vm10, %v355_v52  ;;  %v437_v52 = vld [vmem:[%s2214_s3 + $0x8] sm:$0xff] }
 0x175   : > { %372 = vst.msk [vmem:[#allocation3 + $0xc0] sm:$0xff] %vm371_vm11, %v1532_v8 }
 0x179   : > { %500 = vperm.xlu1 %1520, %v450_v53   ;;  %v455_v53 = vld [vmem:[#allocation3 + $0x18] sm:$0xff] }
 0x17c   : > { %v235_v54 = vpop.permute.xlu2 %234  ;;  %v476_v29 = vld [vmem:[#allocation3 + $0xc0] sm:$0xff] }
 0x17d   : > { %247 = vst.msk [vmem:[#allocation3 + $0x40] sm:$0xff] %vm246_vm12, %v235_v54  ;;  %v454_v54 = vld [vmem:[#allocation3 + $0x10] sm:$0xff] }
 0x17e   : > { %252 = vst.msk [vmem:[#allocation3 + $0x40] sm:$0xff] %vm251_vm13, %v1532_v8 }
 0x184   : > { %v327_v55 = vpop.permute.xlu2 %326 }
 0x185   : > { %338 = vst.msk [vmem:[#allocation3 + $0xa8] sm:$0xff] %vm336_vm14, %v327_v55  ;;  %v460_v31 = vld [vmem:[#allocation3 + $0x40] sm:$0xff]  ;;  %v453_v55 = vld [vmem:[#allocation3 + $0x8] sm:$0xff] }
 0x186   : > { %343 = vst.msk [vmem:[#allocation3 + $0xa8] sm:$0xff] %vm341_vm15, %v1532_v8 }
 0x18b   : > { %v385_v56 = vpop.permute.xlu0 %384 }
 0x18c   : > { %397 = vst.msk [vmem:[#allocation3 + $0xe0] sm:$0xff] %vm396_vm0, %v385_v56  ;;  %v389_v57 = vpop.permute.xlu2 %388  ;;  %v436_v56 = vld [vmem:[%s2214_s3] sm:$0xff] }
 0x18d   : > { %402 = vst.msk [vmem:[#allocation3 + $0xe0] sm:$0xff] %vm401_vm1, %v1532_v8  ;;  %v473_v40 = vld [vmem:[#allocation3 + $0xa8] sm:$0xff] }
 0x18e   : > { %399 = vst.msk [vmem:[#allocation3 + $0xf0] sm:$0xff] %vm396_vm0, %v389_v57  ;;  %v452_v57 = vld [vmem:[#allocation3] sm:$0xff] }
 0x18f   : > { %404 = vst.msk [vmem:[#allocation3 + $0xf0] sm:$0xff] %vm401_vm1, %v1532_v8 }
 0x193   : > { %v387_v58 = vpop.permute.xlu1 %386  ;;  %v265_v59 = vpop.permute.xlu0 %264 }
 0x194   : > { %398 = vst.msk [vmem:[#allocation3 + $0xe8] sm:$0xff] %vm396_vm0, %v387_v58  ;;  %v269_v60 = vpop.permute.xlu2 %268  ;;  %v480_v18 = vld [vmem:[#allocation3 + $0xe0] sm:$0xff] }
 0x195   : > { %403 = vst.msk [vmem:[#allocation3 + $0xe8] sm:$0xff] %vm401_vm1, %v1532_v8 }
 0x196   : > { %277 = vst.msk [vmem:[#allocation3 + $0x60] sm:$0xff] %vm276_vm2, %v265_v59  ;;  %v482_v14 = vld [vmem:[#allocation3 + $0xf0] sm:$0xff] }
 0x197   : > { %282 = vst.msk [vmem:[#allocation3 + $0x60] sm:$0xff] %vm2221_vm3, %v1532_v8 }
 0x198   : > { %279 = vst.msk [vmem:[#allocation3 + $0x70] sm:$0xff] %vm276_vm2, %v269_v60  ;;  %v440_v60 = vld [vmem:[%s2214_s3 + $0x20] sm:$0xff] }
 0x199   : > { %284 = vst.msk [vmem:[#allocation3 + $0x70] sm:$0xff] %vm2221_vm3, %v1532_v8 }
 0x19b   : > { %v267_v61 = vpop.permute.xlu1 %266  ;;  %v357_v62 = vpop.permute.xlu0 %356 }
 0x19c   : > { %278 = vst.msk [vmem:[#allocation3 + $0x68] sm:$0xff] %vm276_vm2, %v267_v61  ;;  %v207_v63 = vpop.permute.xlu2 %206  ;;  %v481_v16 = vld [vmem:[#allocation3 + $0xe8] sm:$0xff] }
 0x19d   : > { %283 = vst.msk [vmem:[#allocation3 + $0x68] sm:$0xff] %vm2221_vm3, %v1532_v8  ;;  %v438_v61 = vld [vmem:[%s2214_s3 + $0x10] sm:$0xff] }
 0x19e   : > { %368 = vst.msk [vmem:[#allocation3 + $0xc8] sm:$0xff] %vm366_vm10, %v357_v62  ;;  %v464_v21 = vld [vmem:[#allocation3 + $0x60] sm:$0xff]  ;;  %v439_v62 = vld [vmem:[%s2214_s3 + $0x18] sm:$0xff] }
 0x19f   : > { %373 = vst.msk [vmem:[#allocation3 + $0xc8] sm:$0xff] %vm371_vm11, %v1532_v8 }
 0x1a0   : > { %218 = vst.msk [vmem:[#allocation3 + $0x28] sm:$0xff] %vm216_vm4, %v207_v63  ;;  %v466_v17 = vld [vmem:[#allocation3 + $0x70] sm:$0xff] }
 0x1a1   : > { %223 = vst.msk [vmem:[#allocation3 + $0x28] sm:$0xff] %vm221_vm5, %v1532_v8  ;;  %v443_v63 = vld [vmem:[%s2214_s3 + $0x38] sm:$0xff] }
 0x1a3   : > { %v359_v0 = vpop.permute.xlu1 %358  ;;  %v237_v1 = vpop.permute.xlu0 %236 }
 0x1a4   : > { %369 = vst.msk [vmem:[#allocation3 + $0xd0] sm:$0xff] %vm366_vm10, %v359_v0  ;;  %v361_v2 = vpop.permute.xlu2 %360  ;;  %v465_v19 = vld [vmem:[#allocation3 + $0x68] sm:$0xff]  ;;  %v441_v0 = vld [vmem:[%s2214_s3 + $0x28] sm:$0xff] }
 0x1a5   : > { %374 = vst.msk [vmem:[#allocation3 + $0xd0] sm:$0xff] %vm371_vm11, %v1532_v8 }
 0x1a6   : > { %248 = vst.msk [vmem:[#allocation3 + $0x48] sm:$0xff] %vm246_vm12, %v237_v1  ;;  %v477_v27 = vld [vmem:[#allocation3 + $0xc8] sm:$0xff] }
 0x1a7   : > { %253 = vst.msk [vmem:[#allocation3 + $0x48] sm:$0xff] %vm251_vm13, %v1532_v8  ;;  %v442_v1 = vld [vmem:[%s2214_s3 + $0x30] sm:$0xff] }
 0x1a8   : > { %370 = vst.msk [vmem:[#allocation3 + $0xd8] sm:$0xff] %vm366_vm10, %v361_v2  ;;  %v457_v47 = vld [vmem:[#allocation3 + $0x28] sm:$0xff] }
 0x1a9   : > { %375 = vst.msk [vmem:[#allocation3 + $0xd8] sm:$0xff] %vm371_vm11, %v1532_v8  ;;  %v446_v2 = vld [vmem:[%s2214_s3 + $0x50] sm:$0xff] }
 0x1ab   : > { %v239_v3 = vpop.permute.xlu1 %238  ;;  %v329_v4 = vpop.permute.xlu0 %328 }
 0x1ac   : > { %249 = vst.msk [vmem:[#allocation3 + $0x50] sm:$0xff] %vm246_vm12, %v239_v3  ;;  %v241_v5 = vpop.permute.xlu2 %240  ;;  %v478_v25 = vld [vmem:[#allocation3 + $0xd0] sm:$0xff]  ;;  %v444_v3 = vld [vmem:[%s2214_s3 + $0x40] sm:$0xff] }
 0x1ad   : > { %254 = vst.msk [vmem:[#allocation3 + $0x50] sm:$0xff] %vm251_vm13, %v1532_v8 }
 0x1ae   : > { %339 = vst.msk [vmem:[#allocation3 + $0xb0] sm:$0xff] %vm336_vm14, %v329_v4  ;;  %v461_v30 = vld [vmem:[#allocation3 + $0x48] sm:$0xff]  ;;  %v445_v4 = vld [vmem:[%s2214_s3 + $0x48] sm:$0xff] }
 0x1af   : > { %344 = vst.msk [vmem:[#allocation3 + $0xb0] sm:$0xff] %vm341_vm15, %v1532_v8 }
 0x1b0   : > { %250 = vst.msk [vmem:[#allocation3 + $0x58] sm:$0xff] %vm246_vm12, %v241_v5  ;;  %v479_v20 = vld [vmem:[#allocation3 + $0xd8] sm:$0xff]  ;;  %v447_v5 = vld [vmem:[%s2214_s3 + $0x58] sm:$0xff] }
 0x1b1   : > { %255 = vst.msk [vmem:[#allocation3 + $0x58] sm:$0xff] %vm251_vm13, %v1532_v8 }
 0x1b3   : > { %v391_v6 = vpop.permute.xlu1 %390  ;;  %v271_v7 = vpop.permute.xlu0 %270 }
 0x1b4   : > { %400 = vst.msk [vmem:[#allocation3 + $0xf8] sm:$0xff] %vm396_vm0, %v391_v6  ;;  %v299_v9 = vpop.permute.xlu2 %298  ;;  %v462_v28 = vld [vmem:[#allocation3 + $0x50] sm:$0xff] }
 0x1b5   : > { %405 = vst.msk [vmem:[#allocation3 + $0xf8] sm:$0xff] %vm401_vm1, %v1532_v8 }
 0x1b6   : > { %280 = vst.msk [vmem:[#allocation3 + $0x78] sm:$0xff] %vm276_vm2, %v271_v7  ;;  %v474_v39 = vld [vmem:[#allocation3 + $0xb0] sm:$0xff] }
 0x1b7   : > { %285 = vst.msk [vmem:[#allocation3 + $0x78] sm:$0xff] %vm2221_vm3, %v1532_v8  ;;  %vm2222_vm3 = vcmask 523632  }
 0x1b8   : > { %309 = vst.msk [vmem:[#allocation3 + $0x90] sm:$0xff] %vm306_vm6, %v299_v9  ;;  %v463_v26 = vld [vmem:[#allocation3 + $0x58] sm:$0xff] }
 0x1b9   : > { %314 = vst.msk [vmem:[#allocation3 + $0x90] sm:$0xff] %vm311_vm7, %v1532_v8 }
 0x1bb   : > { %v325_v10 = vpop.permute.xlu1 %324  ;;  %v209_v11 = vpop.permute.xlu0 %208 }
 0x1bc   : > { %337 = vst.msk [vmem:[#allocation3 + $0xa0] sm:$0xff] %vm336_vm14, %v325_v10  ;;  %v419_v12 = vpop.permute.xlu2 %418  ;;  %v483_v13 = vld [vmem:[#allocation3 + $0xf8] sm:$0xff] }
 0x1bd   : > { %342 = vst.msk [vmem:[#allocation3 + $0xa0] sm:$0xff] %vm341_vm15, %v1532_v8  ;;  %550 = vmatpush.msra.mxu2 %v483_v13 }
 0x1be   : > { %219 = vst.msk [vmem:[#allocation3 + $0x30] sm:$0xff] %vm216_vm4, %v209_v11  ;;  %v467_v15 = vld [vmem:[#allocation3 + $0x78] sm:$0xff] }
 0x1bf   : > { %224 = vst.msk [vmem:[#allocation3 + $0x30] sm:$0xff] %vm221_vm5, %v1532_v8  ;;  %551 = vmatpush.msra.mxu2 %v482_v14  ;;  %521 = vmatpush.msra.mxu1 %v467_v15 }
 0x1c0   : > { %429 = vst.msk [vmem:[#allocation3 + $0x110] sm:$0xff] %vm2225_vm8, %v419_v12  ;;  %v470_v46 = vld [vmem:[#allocation3 + $0x90] sm:$0xff] }
 0x1c1   : > { %434 = vst.msk [vmem:[#allocation3 + $0x110] sm:$0xff] %vm2222_vm3, %v1532_v8  ;;  %552 = vmatpush.msra.mxu2 %v481_v16  ;;  %522 = vmatpush.msra.mxu1 %v466_v17 }
 0x1c3   : > { %v301_v22 = vpop.permute.xlu0 %300  ;;  %v205_v23 = vpop.permute.xlu1 %204  ;;  %553 = vmatpush.msra.mxu2 %v480_v18  ;;  %523 = vmatpush.msra.mxu1 %v465_v19 }
 0x1c4   : > { %310 = vst.msk [vmem:[#allocation3 + $0x98] sm:$0xff] %vm306_vm6, %v301_v22  ;;  %v415_v24 = vpop.permute.xlu2 %414  ;;  %v472_v41 = vld [vmem:[#allocation3 + $0xa0] sm:$0xff] }
 0x1c5   : > { %315 = vst.msk [vmem:[#allocation3 + $0x98] sm:$0xff] %vm311_vm7, %v1532_v8  ;;  %554 = vmatpush.msra.mxu2 %v479_v20  ;;  %524 = vmatpush.msra.mxu1 %v464_v21 }
 0x1c6   : > { %427 = vst.msk [vmem:[#allocation3 + $0x100] sm:$0xff] %vm2225_vm8, %v415_v24  ;;  %v458_v45 = vld [vmem:[#allocation3 + $0x30] sm:$0xff] }
 0x1c7   : > { %432 = vst.msk [vmem:[#allocation3 + $0x100] sm:$0xff] %vm2222_vm3, %v1532_v8  ;;  %555 = vmatpush.msra.mxu2 %v478_v25  ;;  %525 = vmatpush.msra.mxu1 %v463_v26 }
 0x1c8   : > { %217 = vst.msk [vmem:[#allocation3 + $0x20] sm:$0xff] %vm216_vm4, %v205_v23  ;;  %v486_v37 = vld [vmem:[#allocation3 + $0x110] sm:$0xff] }
 0x1c9   : > { %222 = vst.msk [vmem:[#allocation3 + $0x20] sm:$0xff] %vm221_vm5, %v1532_v8  ;;  %556 = vmatpush.msra.mxu2 %v477_v27  ;;  %526 = vmatpush.msra.mxu1 %v462_v28 }
 0x1cb   : > { %v421_v32 = vpop.permute.xlu0 %420  ;;  %v331_v33 = vpop.permute.xlu1 %330  ;;  %557 = vmatpush.msra.mxu2 %v476_v29  ;;  %527 = vmatpush.msra.mxu1 %v461_v30 }
 0x1cc   : > { %430 = vst.msk [vmem:[#allocation3 + $0x118] sm:$0xff] %vm2225_vm8, %v421_v32  ;;  %v471_v43 = vld [vmem:[#allocation3 + $0x98] sm:$0xff]  ;;  %v496_v17 = vpop.permute.xlu2 %495 }
 0x1cd   : > { %435 = vst.msk [vmem:[#allocation3 + $0x118] sm:$0xff] %vm2222_vm3, %v1532_v8  ;;  %528 = vmatpush.msra.mxu1 %v460_v31 }
 0x1ce   : > { %340 = vst.msk [vmem:[#allocation3 + $0xb8] sm:$0xff] %vm336_vm14, %v331_v33  ;;  %v484_v59 = vld [vmem:[#allocation3 + $0x100] sm:$0xff] }
 0x1cf   : > { %345 = vst.msk [vmem:[#allocation3 + $0xb8] sm:$0xff] %vm341_vm15, %v1532_v8 }
 0x1d0   : > { %v456_v48 = vld [vmem:[#allocation3 + $0x20] sm:$0xff] }
 0x1d3   : > { %v295_v34 = vpop.permute.xlu0 %294  ;;  %v211_v35 = vpop.permute.xlu1 %210 }
 0x1d4   : > { %307 = vst.msk [vmem:[#allocation3 + $0x80] sm:$0xff] %vm306_vm6, %v295_v34  ;;  %v487_v36 = vld [vmem:[#allocation3 + $0x118] sm:$0xff] }
 0x1d5   : > { %312 = vst.msk [vmem:[#allocation3 + $0x80] sm:$0xff] %vm311_vm7, %v1532_v8  ;;  %591 = vmatpush.msra.mxu3 %v487_v36 }
 0x1d6   : > { %220 = vst.msk [vmem:[#allocation3 + $0x38] sm:$0xff] %vm216_vm4, %v211_v35  ;;  %v475_v38 = vld [vmem:[#allocation3 + $0xb8] sm:$0xff] }
 0x1d7   : > { %225 = vst.msk [vmem:[#allocation3 + $0x38] sm:$0xff] %vm221_vm5, %v1532_v8  ;;  %558 = vmatpush.msra.mxu2 %v475_v38  ;;  %592 = vmatpush.msra.mxu3 %v486_v37 }
 0x1d9   : > { %559 = vmatpush.msra.mxu2 %v474_v39 }
 0x1db   : > { %v297_v42 = vpop.permute.xlu1 %296  ;;  %560 = vmatpush.msra.mxu2 %v473_v40  ;;  %v506_v6 = vpop.permute.xlu0 %505 }
 0x1dc   : > { %308 = vst.msk [vmem:[#allocation3 + $0x88] sm:$0xff] %vm306_vm6, %v297_v42  ;;  %v468_v51 = vld [vmem:[#allocation3 + $0x80] sm:$0xff] }
 0x1dd   : > { %313 = vst.msk [vmem:[#allocation3 + $0x88] sm:$0xff] %vm311_vm7, %v1532_v8  ;;  %561 = vmatpush.msra.mxu2 %v472_v41 }
 0x1de   : > { %v459_v44 = vld [vmem:[#allocation3 + $0x38] sm:$0xff] }
 0x1df   : > { %529 = vmatpush.msra.mxu1 %v459_v44  ;;  %562 = vmatpush.msra.mxu2 %v471_v43  ;;  %v863_v43 = vld [vmem:[%s2217_s6 + $0x18] sm:$0xff]  ;;  %v860_v44 = vld [vmem:[%s2217_s6] sm:$0xff] }
 0x1e1   : > { %530 = vmatpush.msra.mxu1 %v458_v45  ;;  %563 = vmatpush.msra.mxu2 %v470_v46  ;;  %v862_v45 = vld [vmem:[%s2217_s6 + $0x10] sm:$0xff]  ;;  %v861_v46 = vld [vmem:[%s2217_s6 + $0x8] sm:$0xff] }
 0x1e3   : > { %531 = vmatpush.msra.mxu1 %v457_v47  ;;  %v417_v49 = vpop.permute.xlu1 %416  ;;  %v491_v10 = vpop.permute.xlu0 %490 }
 0x1e4   : > { %428 = vst.msk [vmem:[#allocation3 + $0x108] sm:$0xff] %vm2225_vm8, %v417_v49  ;;  %v469_v50 = vld [vmem:[#allocation3 + $0x88] sm:$0xff] }
 0x1e5   : > { %532 = vmatpush.msra.mxu1 %v456_v48  ;;  %433 = vst.msk [vmem:[#allocation3 + $0x108] sm:$0xff] %vm2222_vm3, %v1532_v8  ;;  %564 = vmatpush.msra.mxu2 %v469_v50  ;;  %vm2224_vm3 = vcmask 261120  }
 0x1e7   : > { %533 = vmatpush.msra.mxu1 %v455_v53  ;;  %565 = vmatpush.msra.mxu2 %v468_v51 }
 0x1e8   : > { %566 = vmatmul.f32.vlgmr.msra.gmra.mxu2 %v437_v52 }
 0x1e9   : > { %534 = vmatpush.msra.mxu1 %v454_v54 }
 0x1eb   : > { %535 = vmatpush.msra.mxu1 %v453_v55  ;;  %v501_v24 = vpop.permute.xlu1 %500 }
 0x1ec   : > { %v485_v58 = vld [vmem:[#allocation3 + $0x108] sm:$0xff] }
 0x1ed   : > { %536 = vmatpush.msra.mxu1 %v452_v57  ;;  %593 = vmatpush.msra.mxu3 %v485_v58 }
 0x1ee   : > { %537 = vmatmul.f32.vlgmr.msra.gmra.mxu1 %v436_v56 }
 0x1ef   : > { %594 = vmatpush.msra.mxu3 %v484_v59 }
 0x1f0   : > { %569 = vmatmul.f32.gmra.mxu2 %v440_v60  ;;  %1483 = vmatmul.msk.f32.vlgmr.msra.gmra.mxu3 %vm2224_vm3, %v438_v61 }
 0x1f6   : > { %540 = vmatmul.f32.gmra.mxu1 %v439_v62 }
 0x1f8   : > { %572 = vmatmul.f32.gmra.mxu2 %v443_v63  ;;  %1484 = vmatmul.msk.f32.gmra.mxu3 %vm2224_vm3, %v441_v0 }
 0x1fe   : > { %543 = vmatmul.f32.gmra.mxu1 %v442_v1 }
 0x200   : > { %575 = vmatmul.f32.gmra.mxu2 %v446_v2  ;;  %1485 = vmatmul.msk.f32.gmra.mxu3 %vm2224_vm3, %v444_v3 }
 0x206   : > { %546 = vmatmul.f32.gmra.mxu1 %v445_v4 }
 0x208   : > { %1486 = vmatmul.msk.f32.gmra.mxu3 %vm2224_vm3, %v447_v5 }
 0x26b   : > { %v538_v7 = vpop.f32.mrf.mxu1  ;;  %v567_v9 = vpop.f32.mrf.mxu2 }
 0x26c   : > { %v539_v11 = vadd.f32 %v538_v7, %v491_v10 }
 0x26e   : > { %v568_v12 = vadd.f32 %v567_v9, %v539_v11 }
 0x273   : > { %v541_v13 = vpop.f32.mrf.mxu1  ;;  %v570_v14 = vpop.f32.mrf.mxu2 }
 0x274   : > { %v596_v15 = vpop.f32.mrf.mxu3  ;;  %v542_v18 = vadd.f32 %v541_v13, %v496_v17 }
 0x275   : > { %v597_v16 = vadd.f32 %v596_v15, %v568_v12 }
 0x276   : > { %v571_v20 = vadd.f32 %v570_v14, %v542_v18 }
 0x277   : > { %v608_v19 = vmax.f32 %v597_v16, 0.0 }
 0x279   : > { %612 = vst.msk [vmem:[#allocation4] sm:$0xff] %vm2223_vm9, %v608_v19 }
 0x27b   : > { %v544_v21 = vpop.f32.mrf.mxu1  ;;  %v573_v25 = vpop.f32.mrf.mxu2 }
 0x27c   : > { %v599_v22 = vpop.f32.mrf.mxu3  ;;  %v545_v26 = vadd.f32 %v544_v21, %v501_v24 }
 0x27d   : > { %v600_v23 = vadd.f32 %v599_v22, %v571_v20 }
 0x27e   : > { %v574_v29 = vadd.f32 %v573_v25, %v545_v26 }
 0x27f   : > { %v609_v27 = vmax.f32 %v600_v23, 0.0 }
 0x280   : > { %v792_v28 = vld [vmem:[#allocation4] sm:$0xff] }
 0x281   : > { %613 = vst.msk [vmem:[#allocation4 + $0x8] sm:$0xff] %vm2223_vm9, %v609_v27  ;;  %800 = vrot.lane.b32.xlu0 %v792_v28, %s1534_s13  ;;  %688 = vrot.lane.b32.xlu1 %v792_v28, %s1530_s15 }
 0x282   : > { %660 = vrot.lane.b32.xlu2 %v792_v28, %s1536_s18  ;;  %620 = vst.msk [vmem:[#allocation3] sm:$0xff] %vm2223_vm9, %v792_v28 }
 0x283   : > { %v547_v30 = vpop.f32.mrf.mxu1  ;;  %v576_v35 = vpop.f32.mrf.mxu2 }
 0x284   : > { %v602_v31 = vpop.f32.mrf.mxu3  ;;  %v548_v33 = vadd.f32 %v547_v30, %v506_v6 }
 0x285   : > { %v603_v32 = vadd.f32 %v602_v31, %v574_v29 }
 0x286   : > { %v577_v37 = vadd.f32 %v576_v35, %v548_v33 }
 0x287   : > { %v610_v34 = vmax.f32 %v603_v32, 0.0 }
 0x288   : > { %v681_v36 = vld [vmem:[#allocation4 + $0x8] sm:$0xff] }
 0x289   : > { %614 = vst.msk [vmem:[#allocation4 + $0x10] sm:$0xff] %vm2223_vm9, %v610_v34  ;;  %690 = vrot.lane.b32.xlu0 %v681_v36, %s1530_s15  ;;  %632 = vrot.lane.b32.xlu1 %v792_v28, %s1531_s16 }
 0x28a   : > { %772 = vrot.lane.b32.xlu2 %v792_v28, %s1535_s17  ;;  %621 = vst.msk [vmem:[#allocation3 + $0x8] sm:$0xff] %vm2223_vm9, %v681_v36 }
 0x28c   : > { %v605_v38 = vpop.f32.mrf.mxu3 }
 0x28d   : > { %v606_v39 = vadd.f32 %v605_v38, %v577_v37 }
 0x28f   : > { %v611_v40 = vmax.f32 %v606_v39, 0.0 }
 0x290   : > { %v682_v41 = vld [vmem:[#allocation4 + $0x10] sm:$0xff] }
 0x291   : > { %615 = vst.msk [vmem:[#allocation4 + $0x18] sm:$0xff] %vm2223_vm9, %v611_v40  ;;  %662 = vrot.lane.b32.xlu0 %v681_v36, %s1536_s18  ;;  %802 = vrot.lane.b32.xlu1 %v681_v36, %s1534_s13 }
 0x292   : > { %634 = vrot.lane.b32.xlu2 %v681_v36, %s1531_s16  ;;  %622 = vst.msk [vmem:[#allocation3 + $0x10] sm:$0xff] %vm2223_vm9, %v682_v41 }
 0x298   : > { %v795_v42 = vld [vmem:[#allocation4 + $0x18] sm:$0xff] }
 0x299   : > { %774 = vrot.lane.b32.xlu0 %v681_v36, %s1535_s17  ;;  %664 = vrot.lane.b32.xlu1 %v682_v41, %s1536_s18  ;;  %623 = vst.msk [vmem:[#allocation3 + $0x18] sm:$0xff] %vm2223_vm9, %v795_v42  ;;  %vm2226_vm9 = vcmask 523712  }
 0x29a   : > { %692 = vrot.lane.b32.xlu2 %v682_v41, %s1530_s15  ;;  %vm2227_vm3 = vmmov %vm2226_vm9 }
 0x29b   : > { %vm2228_vm8 = vmmov %vm2227_vm3 }
 0x2a1   : > { %636 = vrot.lane.b32.xlu0 %v682_v41, %s1531_s16  ;;  %776 = vrot.lane.b32.xlu1 %v682_v41, %s1535_s17 }
 0x2a2   : > { %804 = vrot.lane.b32.xlu2 %v682_v41, %s1534_s13 }
 0x2a9   : > { %806 = vrot.lane.b32.xlu0 %v795_v42, %s1534_s13  ;;  %694 = vrot.lane.b32.xlu1 %v795_v42, %s1530_s15 }
 0x2aa   : > { %746 = vrot.lane.b32.xlu2 %v681_v36, %s1537_s19 }
 0x2b1   : > { %744 = vrot.lane.b32.xlu0 %v792_v28, %s1537_s19  ;;  %748 = vrot.lane.b32.xlu1 %v682_v41, %s1537_s19 }
 0x2b2   : > { %666 = vrot.lane.b32.xlu2 %v795_v42, %s1536_s18 }
 0x2b9   : > { %750 = vrot.lane.b32.xlu0 %v795_v42, %s1537_s19  ;;  %638 = vrot.lane.b32.xlu1 %v795_v42, %s1531_s16 }
 0x2ba   : > { %778 = vrot.lane.b32.xlu2 %v795_v42, %s1535_s17 }
 0x2c1   : > { %834 = vrot.lane.b32.xlu0 %v795_v42, %s1538_s20  ;;  %718 = vrot.lane.b32.xlu1 %v681_v36, %s1529_s14 }
 0x2c2   : > { %720 = vrot.lane.b32.xlu2 %v682_v41, %s1529_s14 }
 0x2c9   : > { %716 = vrot.lane.b32.xlu0 %v792_v28, %s1529_s14  ;;  %722 = vrot.lane.b32.xlu1 %v795_v42, %s1529_s14  ;;  %v866_v42 = vld [vmem:[#allocation3 + $0x10] sm:$0xff] }
 0x2ca   : > { %832 = vrot.lane.b32.xlu2 %v682_v41, %s1538_s20  ;;  %v867_v41 = vld [vmem:[#allocation3 + $0x18] sm:$0xff] }
 0x2d1   : > { %917 = vperm.xlu0 %1519, %v863_v43   ;;  %830 = vrot.lane.b32.xlu1 %v681_v36, %s1538_s20 }
 0x2d2   : > { %828 = vrot.lane.b32.xlu2 %v792_v28, %s1538_s20 }
 0x2d9   : > { %902 = vperm.xlu0 %1519, %v860_v44   ;;  %912 = vperm.xlu1 %1520, %v862_v45   ;;  %v865_v44 = vld [vmem:[#allocation3 + $0x8] sm:$0xff]  ;;  %v848_v45 = vld [vmem:[%s2216_s5] sm:$0xff] }
 0x2da   : > { %907 = vperm.xlu2 %1518, %v861_v46   ;;  %v864_v46 = vld [vmem:[#allocation3] sm:$0xff] }
 0x2dc   : > { %v661_v47 = vpop.permute.xlu2 %660 }
 0x2dd   : > { %672 = vst.msk [vmem:[#allocation3 + $0x40] sm:$0xff] %vm246_vm12, %v661_v47 }
 0x2de   : > { %676 = vst.msk [vmem:[#allocation3 + $0x40] sm:$0xff] %vm251_vm13, %v1532_v8 }
 0x2e4   : > { %v773_v48 = vpop.permute.xlu2 %772 }
 0x2e5   : > { %784 = vst.msk [vmem:[#allocation3 + $0xc0] sm:$0xff] %vm366_vm10, %v773_v48  ;;  %v872_v28 = vld [vmem:[#allocation3 + $0x40] sm:$0xff] }
 0x2e6   : > { %788 = vst.msk [vmem:[#allocation3 + $0xc0] sm:$0xff] %vm371_vm11, %v1532_v8 }
 0x2ec   : > { %v635_v49 = vpop.permute.xlu2 %634 }
 0x2ed   : > { %645 = vst.msk [vmem:[#allocation3 + $0x28] sm:$0xff] %vm216_vm4, %v635_v49  ;;  %v888_v24 = vld [vmem:[#allocation3 + $0xc0] sm:$0xff] }
 0x2ee   : > { %649 = vst.msk [vmem:[#allocation3 + $0x28] sm:$0xff] %vm221_vm5, %v1532_v8 }
 0x2f3   : > { %v801_v50 = vpop.permute.xlu0 %800  ;;  %v689_v51 = vpop.permute.xlu1 %688 }
 0x2f4   : > { %812 = vst.msk [vmem:[#allocation3 + $0xe0] sm:$0xff] %vm396_vm0, %v801_v50  ;;  %v693_v52 = vpop.permute.xlu2 %692 }
 0x2f5   : > { %816 = vst.msk [vmem:[#allocation3 + $0xe0] sm:$0xff] %vm401_vm1, %v1532_v8  ;;  %v869_v35 = vld [vmem:[#allocation3 + $0x28] sm:$0xff] }
 0x2f6   : > { %700 = vst.msk [vmem:[#allocation3 + $0x60] sm:$0xff] %vm276_vm2, %v689_v51  ;;  %v849_v51 = vld [vmem:[%s2216_s5 + $0x8] sm:$0xff] }
 0x2f7   : > { %704 = vst.msk [vmem:[#allocation3 + $0x60] sm:$0xff] %vm2226_vm9, %v1532_v8  ;;  %vm2229_vm9 = vmmov %vm2227_vm3 }
 0x2f8   : > { %702 = vst.msk [vmem:[#allocation3 + $0x70] sm:$0xff] %vm276_vm2, %v693_v52 }
 0x2f9   : > { %706 = vst.msk [vmem:[#allocation3 + $0x70] sm:$0xff] %vm2227_vm3, %v1532_v8  ;;  %vm2230_vm3 = vcmask 375808  }
 0x2fb   : > { %v691_v53 = vpop.permute.xlu0 %690  ;;  %v633_v54 = vpop.permute.xlu1 %632 }
 0x2fc   : > { %701 = vst.msk [vmem:[#allocation3 + $0x68] sm:$0xff] %vm276_vm2, %v691_v53  ;;  %v805_v55 = vpop.permute.xlu2 %804  ;;  %v892_v13 = vld [vmem:[#allocation3 + $0xe0] sm:$0xff] }
 0x2fd   : > { %705 = vst.msk [vmem:[#allocation3 + $0x68] sm:$0xff] %vm2228_vm8, %v1532_v8  ;;  %vm2231_vm8 = vcmask 523632  }
 0x2fe   : > { %814 = vst.msk [vmem:[#allocation3 + $0xf0] sm:$0xff] %vm396_vm0, %v805_v55  ;;  %v876_v19 = vld [vmem:[#allocation3 + $0x60] sm:$0xff]  ;;  %v850_v55 = vld [vmem:[%s2216_s5 + $0x10] sm:$0xff] }
 0x2ff   : > { %818 = vst.msk [vmem:[#allocation3 + $0xf0] sm:$0xff] %vm401_vm1, %v1532_v8 }
 0x300   : > { %644 = vst.msk [vmem:[#allocation3 + $0x20] sm:$0xff] %vm216_vm4, %v633_v54  ;;  %v878_v12 = vld [vmem:[#allocation3 + $0x70] sm:$0xff] }
 0x301   : > { %648 = vst.msk [vmem:[#allocation3 + $0x20] sm:$0xff] %vm221_vm5, %v1532_v8  ;;  %v851_v54 = vld [vmem:[%s2216_s5 + $0x18] sm:$0xff] }
 0x303   : > { %v663_v56 = vpop.permute.xlu0 %662  ;;  %v803_v57 = vpop.permute.xlu1 %802 }
 0x304   : > { %673 = vst.msk [vmem:[#allocation3 + $0x48] sm:$0xff] %vm246_vm12, %v663_v56  ;;  %v747_v58 = vpop.permute.xlu2 %746  ;;  %v877_v14 = vld [vmem:[#allocation3 + $0x68] sm:$0xff]  ;;  %v852_v56 = vld [vmem:[%s2216_s5 + $0x20] sm:$0xff] }
 0x305   : > { %677 = vst.msk [vmem:[#allocation3 + $0x48] sm:$0xff] %vm251_vm13, %v1532_v8 }
 0x306   : > { %757 = vst.msk [vmem:[#allocation3 + $0xa8] sm:$0xff] %vm336_vm14, %v747_v58  ;;  %v894_v9 = vld [vmem:[#allocation3 + $0xf0] sm:$0xff]  ;;  %v853_v58 = vld [vmem:[%s2216_s5 + $0x28] sm:$0xff] }
 0x307   : > { %761 = vst.msk [vmem:[#allocation3 + $0xa8] sm:$0xff] %vm341_vm15, %v1532_v8 }
 0x308   : > { %813 = vst.msk [vmem:[#allocation3 + $0xe8] sm:$0xff] %vm396_vm0, %v803_v57  ;;  %v868_v38 = vld [vmem:[#allocation3 + $0x20] sm:$0xff]  ;;  %v854_v57 = vld [vmem:[%s2216_s5 + $0x30] sm:$0xff] }
 0x309   : > { %817 = vst.msk [vmem:[#allocation3 + $0xe8] sm:$0xff] %vm401_vm1, %v1532_v8 }
 0x30b   : > { %v775_v59 = vpop.permute.xlu0 %774  ;;  %v665_v60 = vpop.permute.xlu1 %664 }
 0x30c   : > { %785 = vst.msk [vmem:[#allocation3 + $0xc8] sm:$0xff] %vm366_vm10, %v775_v59  ;;  %v667_v61 = vpop.permute.xlu2 %666  ;;  %v873_v25 = vld [vmem:[#allocation3 + $0x48] sm:$0xff]  ;;  %v855_v59 = vld [vmem:[%s2216_s5 + $0x38] sm:$0xff] }
 0x30d   : > { %789 = vst.msk [vmem:[#allocation3 + $0xc8] sm:$0xff] %vm371_vm11, %v1532_v8 }
 0x30e   : > { %675 = vst.msk [vmem:[#allocation3 + $0x58] sm:$0xff] %vm246_vm12, %v667_v61  ;;  %v885_v31 = vld [vmem:[#allocation3 + $0xa8] sm:$0xff]  ;;  %v856_v61 = vld [vmem:[%s2216_s5 + $0x40] sm:$0xff] }
 0x30f   : > { %679 = vst.msk [vmem:[#allocation3 + $0x58] sm:$0xff] %vm251_vm13, %v1532_v8 }
 0x310   : > { %674 = vst.msk [vmem:[#allocation3 + $0x50] sm:$0xff] %vm246_vm12, %v665_v60  ;;  %v893_v10 = vld [vmem:[#allocation3 + $0xe8] sm:$0xff]  ;;  %v857_v60 = vld [vmem:[%s2216_s5 + $0x48] sm:$0xff] }
 0x311   : > { %678 = vst.msk [vmem:[#allocation3 + $0x50] sm:$0xff] %vm251_vm13, %v1532_v8 }
 0x313   : > { %v637_v62 = vpop.permute.xlu0 %636  ;;  %v777_v63 = vpop.permute.xlu1 %776 }
 0x314   : > { %646 = vst.msk [vmem:[#allocation3 + $0x30] sm:$0xff] %vm216_vm4, %v637_v62  ;;  %v779_v0 = vpop.permute.xlu2 %778  ;;  %v889_v22 = vld [vmem:[#allocation3 + $0xc8] sm:$0xff] }
 0x315   : > { %650 = vst.msk [vmem:[#allocation3 + $0x30] sm:$0xff] %vm221_vm5, %v1532_v8  ;;  %v858_v62 = vld [vmem:[%s2216_s5 + $0x50] sm:$0xff] }
 0x316   : > { %787 = vst.msk [vmem:[#allocation3 + $0xd8] sm:$0xff] %vm366_vm10, %v779_v0  ;;  %v875_v21 = vld [vmem:[#allocation3 + $0x58] sm:$0xff] }
 0x317   : > { %791 = vst.msk [vmem:[#allocation3 + $0xd8] sm:$0xff] %vm371_vm11, %v1532_v8 }
 0x318   : > { %786 = vst.msk [vmem:[#allocation3 + $0xd0] sm:$0xff] %vm366_vm10, %v777_v63  ;;  %v874_v23 = vld [vmem:[#allocation3 + $0x50] sm:$0xff] }
 0x319   : > { %790 = vst.msk [vmem:[#allocation3 + $0xd0] sm:$0xff] %vm371_vm11, %v1532_v8  ;;  %v859_v63 = vld [vmem:[%s2216_s5 + $0x58] sm:$0xff] }
 0x31b   : > { %v807_v1 = vpop.permute.xlu0 %806  ;;  %v695_v2 = vpop.permute.xlu1 %694 }
 0x31c   : > { %815 = vst.msk [vmem:[#allocation3 + $0xf8] sm:$0xff] %vm396_vm0, %v807_v1  ;;  %v721_v3 = vpop.permute.xlu2 %720  ;;  %v870_v33 = vld [vmem:[#allocation3 + $0x30] sm:$0xff] }
 0x31d   : > { %819 = vst.msk [vmem:[#allocation3 + $0xf8] sm:$0xff] %vm401_vm1, %v1532_v8 }
 0x31e   : > { %730 = vst.msk [vmem:[#allocation3 + $0x90] sm:$0xff] %vm306_vm6, %v721_v3  ;;  %v891_v15 = vld [vmem:[#allocation3 + $0xd8] sm:$0xff] }
 0x31f   : > { %734 = vst.msk [vmem:[#allocation3 + $0x90] sm:$0xff] %vm311_vm7, %v1532_v8 }
 0x320   : > { %703 = vst.msk [vmem:[#allocation3 + $0x78] sm:$0xff] %vm276_vm2, %v695_v2  ;;  %v890_v20 = vld [vmem:[#allocation3 + $0xd0] sm:$0xff] }
 0x321   : > { %707 = vst.msk [vmem:[#allocation3 + $0x78] sm:$0xff] %vm2229_vm9, %v1532_v8  ;;  %vm2232_vm9 = vmmov %vm2230_vm3 }
 0x323   : > { %v745_v4 = vpop.permute.xlu0 %744  ;;  %v749_v5 = vpop.permute.xlu1 %748 }
 0x324   : > { %756 = vst.msk [vmem:[#allocation3 + $0xa0] sm:$0xff] %vm336_vm14, %v745_v4  ;;  %v833_v6 = vpop.permute.xlu2 %832  ;;  %v895_v7 = vld [vmem:[#allocation3 + $0xf8] sm:$0xff] }
 0x325   : > { %760 = vst.msk [vmem:[#allocation3 + $0xa0] sm:$0xff] %vm341_vm15, %v1532_v8  ;;  %961 = vmatpush.msrb.mxu0 %v895_v7 }
 0x326   : > { %842 = vst.msk [vmem:[#allocation3 + $0x110] sm:$0xff] %vm2230_vm3, %v833_v6  ;;  %vm2233_vm3 = vmmov %vm2231_vm8  ;;  %v882_v48 = vld [vmem:[#allocation3 + $0x90] sm:$0xff] }
 0x327   : > { %846 = vst.msk [vmem:[#allocation3 + $0x110] sm:$0xff] %vm2231_vm8, %v1532_v8  ;;  %962 = vmatpush.msrb.mxu0 %v894_v9  ;;  %vm2234_vm8 = vmmov %vm2232_vm9 }
 0x328   : > { %758 = vst.msk [vmem:[#allocation3 + $0xb0] sm:$0xff] %vm336_vm14, %v749_v5  ;;  %v879_v11 = vld [vmem:[#allocation3 + $0x78] sm:$0xff] }
 0x329   : > { %762 = vst.msk [vmem:[#allocation3 + $0xb0] sm:$0xff] %vm341_vm15, %v1532_v8  ;;  %932 = vmatpush.msrb.mxu3 %v879_v11  ;;  %963 = vmatpush.msrb.mxu0 %v893_v10 }
 0x32b   : > { %933 = vmatpush.msrb.mxu3 %v878_v12  ;;  %v751_v16 = vpop.permute.xlu0 %750  ;;  %v639_v17 = vpop.permute.xlu1 %638  ;;  %964 = vmatpush.msrb.mxu0 %v892_v13 }
 0x32c   : > { %759 = vst.msk [vmem:[#allocation3 + $0xb8] sm:$0xff] %vm336_vm14, %v751_v16  ;;  %v829_v18 = vpop.permute.xlu2 %828  ;;  %v884_v34 = vld [vmem:[#allocation3 + $0xa0] sm:$0xff] }
 0x32d   : > { %934 = vmatpush.msrb.mxu3 %v877_v14  ;;  %763 = vst.msk [vmem:[#allocation3 + $0xb8] sm:$0xff] %vm341_vm15, %v1532_v8  ;;  %965 = vmatpush.msrb.mxu0 %v891_v15 }
 0x32e   : > { %840 = vst.msk [vmem:[#allocation3 + $0x100] sm:$0xff] %vm2232_vm9, %v829_v18  ;;  %vm2235_vm9 = vmmov %vm2233_vm3  ;;  %v898_v40 = vld [vmem:[#allocation3 + $0x110] sm:$0xff] }
 0x32f   : > { %844 = vst.msk [vmem:[#allocation3 + $0x100] sm:$0xff] %vm2233_vm3, %v1532_v8  ;;  %935 = vmatpush.msrb.mxu3 %v876_v19  ;;  %966 = vmatpush.msrb.mxu0 %v890_v20  ;;  %vm2236_vm3 = vmmov %vm2234_vm8 }
 0x330   : > { %647 = vst.msk [vmem:[#allocation3 + $0x38] sm:$0xff] %vm216_vm4, %v639_v17  ;;  %v886_v30 = vld [vmem:[#allocation3 + $0xb0] sm:$0xff] }
 0x331   : > { %651 = vst.msk [vmem:[#allocation3 + $0x38] sm:$0xff] %vm221_vm5, %v1532_v8  ;;  %936 = vmatpush.msrb.mxu3 %v875_v21  ;;  %967 = vmatpush.msrb.mxu0 %v889_v22 }
 0x333   : > { %937 = vmatpush.msrb.mxu3 %v874_v23  ;;  %v835_v26 = vpop.permute.xlu0 %834  ;;  %v719_v27 = vpop.permute.xlu1 %718  ;;  %968 = vmatpush.msrb.mxu0 %v888_v24 }
 0x334   : > { %843 = vst.msk [vmem:[#allocation3 + $0x118] sm:$0xff] %vm2234_vm8, %v835_v26  ;;  %v887_v29 = vld [vmem:[#allocation3 + $0xb8] sm:$0xff]  ;;  %vm2237_vm8 = vmmov %vm2235_vm9  ;;  %v908_v9 = vpop.permute.xlu2 %907 }
 0x335   : > { %938 = vmatpush.msrb.mxu3 %v873_v25  ;;  %847 = vst.msk [vmem:[#allocation3 + $0x118] sm:$0xff] %vm2235_vm9, %v1532_v8  ;;  %969 = vmatpush.msrb.mxu0 %v887_v29  ;;  %vm2238_vm9 = vcmask 261120  }
 0x336   : > { %729 = vst.msk [vmem:[#allocation3 + $0x88] sm:$0xff] %vm306_vm6, %v719_v27  ;;  %v896_v53 = vld [vmem:[#allocation3 + $0x100] sm:$0xff] }
 0x337   : > { %939 = vmatpush.msrb.mxu3 %v872_v28  ;;  %733 = vst.msk [vmem:[#allocation3 + $0x88] sm:$0xff] %vm311_vm7, %v1532_v8  ;;  %970 = vmatpush.msrb.mxu0 %v886_v30 }
 0x338   : > { %v871_v32 = vld [vmem:[#allocation3 + $0x38] sm:$0xff] }
 0x339   : > { %940 = vmatpush.msrb.mxu3 %v871_v32  ;;  %971 = vmatpush.msrb.mxu0 %v885_v31 }
 0x33b   : > { %941 = vmatpush.msrb.mxu3 %v870_v33  ;;  %v717_v36 = vpop.permute.xlu0 %716  ;;  %v723_v37 = vpop.permute.xlu1 %722  ;;  %972 = vmatpush.msrb.mxu0 %v884_v34 }
 0x33c   : > { %728 = vst.msk [vmem:[#allocation3 + $0x80] sm:$0xff] %vm306_vm6, %v717_v36  ;;  %v899_v39 = vld [vmem:[#allocation3 + $0x118] sm:$0xff] }
 0x33d   : > { %942 = vmatpush.msrb.mxu3 %v869_v35  ;;  %732 = vst.msk [vmem:[#allocation3 + $0x80] sm:$0xff] %vm311_vm7, %v1532_v8  ;;  %1002 = vmatpush.msrb.mxu1 %v899_v39  ;;  %v1273_v39 = vld [vmem:[%s2219_s8 + $0x10] sm:$0xff] }
 0x33e   : > { %731 = vst.msk [vmem:[#allocation3 + $0x98] sm:$0xff] %vm306_vm6, %v723_v37  ;;  %v881_v49 = vld [vmem:[#allocation3 + $0x88] sm:$0xff]  ;;  %v1271_v37 = vld [vmem:[%s2219_s8] sm:$0xff] }
 0x33f   : > { %943 = vmatpush.msrb.mxu3 %v868_v38  ;;  %735 = vst.msk [vmem:[#allocation3 + $0x98] sm:$0xff] %vm311_vm7, %v1532_v8  ;;  %1003 = vmatpush.msrb.mxu1 %v898_v40  ;;  %v1274_v38 = vld [vmem:[%s2219_s8 + $0x18] sm:$0xff] }
 0x341   : > { %944 = vmatpush.msrb.mxu3 %v867_v41  ;;  %v1272_v41 = vld [vmem:[%s2219_s8 + $0x8] sm:$0xff] }
 0x343   : > { %945 = vmatpush.msrb.mxu3 %v866_v42  ;;  %v831_v43 = vpop.permute.xlu1 %830  ;;  %v918_v0 = vpop.permute.xlu0 %917 }
 0x344   : > { %841 = vst.msk [vmem:[#allocation3 + $0x108] sm:$0xff] %vm2236_vm3, %v831_v43  ;;  %v880_v50 = vld [vmem:[#allocation3 + $0x80] sm:$0xff]  ;;  %vm2239_vm3 = vmmov %vm2238_vm9 }
 0x345   : > { %946 = vmatpush.msrb.mxu3 %v865_v44  ;;  %845 = vst.msk [vmem:[#allocation3 + $0x108] sm:$0xff] %vm2237_vm8, %v1532_v8  ;;  %vm2240_vm8 = vmmov %vm2239_vm3 }
 0x346   : > { %v883_v47 = vld [vmem:[#allocation3 + $0x98] sm:$0xff] }
 0x347   : > { %947 = vmatpush.msrb.mxu3 %v864_v46  ;;  %973 = vmatpush.msrb.mxu0 %v883_v47 }
 0x348   : > { %948 = vmatmul.f32.vlgmr.msrb.gmra.mxu3 %v848_v45 }
 0x349   : > { %974 = vmatpush.msrb.mxu0 %v882_v48 }
 0x34b   : > { %975 = vmatpush.msrb.mxu0 %v881_v49  ;;  %v903_v1 = vpop.permute.xlu0 %902  ;;  %v913_v17 = vpop.permute.xlu1 %912 }
 0x34c   : > { %v897_v52 = vld [vmem:[#allocation3 + $0x108] sm:$0xff] }
 0x34d   : > { %976 = vmatpush.msrb.mxu0 %v880_v50  ;;  %1004 = vmatpush.msrb.mxu1 %v897_v52 }
 0x34e   : > { %977 = vmatmul.f32.vlgmr.msrb.gmra.mxu0 %v849_v51 }
 0x34f   : > { %1005 = vmatpush.msrb.mxu1 %v896_v53 }
 0x350   : > { %951 = vmatmul.f32.gmra.mxu3 %v851_v54  ;;  %1487 = vmatmul.msk.f32.vlgmr.msrb.gmra.mxu1 %vm2238_vm9, %v850_v55  ;;  %vm2241_vm9 = vmmov %vm2239_vm3 }
 0x356   : > { %980 = vmatmul.f32.gmra.mxu0 %v852_v56 }
 0x358   : > { %954 = vmatmul.f32.gmra.mxu3 %v854_v57  ;;  %1488 = vmatmul.msk.f32.gmra.mxu1 %vm2239_vm3, %v853_v58  ;;  %vm2242_vm3 = vcmask 523264  }
 0x35e   : > { %983 = vmatmul.f32.gmra.mxu0 %v855_v59 }
 0x360   : > { %957 = vmatmul.f32.gmra.mxu3 %v857_v60  ;;  %1489 = vmatmul.msk.f32.gmra.mxu1 %vm2240_vm8, %v856_v61  ;;  %vm2243_vm8 = vmmov %vm2242_vm3 }
 0x366   : > { %986 = vmatmul.f32.gmra.mxu0 %v858_v62 }
 0x368   : > { %1490 = vmatmul.msk.f32.gmra.mxu1 %vm2241_vm9, %v859_v63  ;;  %vm2244_vm9 = vmmov %vm2242_vm3 }
 0x3cb   : > { %v949_v2 = vpop.f32.mrf.mxu3  ;;  %v978_v3 = vpop.f32.mrf.mxu0 }
 0x3cc   : > { %v950_v4 = vadd.f32 %v949_v2, %v903_v1 }
 0x3cd   : > { %v1007_v5 = vpop.f32.mrf.mxu1 }
 0x3ce   : > { %v979_v6 = vadd.f32 %v978_v3, %v950_v4 }
 0x3d0   : > { %v1008_v7 = vadd.f32 %v1007_v5, %v979_v6 }
 0x3d2   : > { %v1019_v10 = vmax.f32 %v1008_v7, 0.0 }
 0x3d3   : > { %v952_v11 = vpop.f32.mrf.mxu3  ;;  %v981_v12 = vpop.f32.mrf.mxu0 }
 0x3d4   : > { %1023 = vst.msk [vmem:[#allocation4] sm:$0xff] %vm2242_vm3, %v1019_v10  ;;  %v953_v13 = vadd.f32 %v952_v11, %v908_v9 }
 0x3d5   : > { %v1010_v14 = vpop.f32.mrf.mxu1 }
 0x3d6   : > { %v982_v15 = vadd.f32 %v981_v12, %v953_v13 }
 0x3d8   : > { %v1011_v16 = vadd.f32 %v1010_v14, %v982_v15 }
 0x3da   : > { %v1020_v18 = vmax.f32 %v1011_v16, 0.0 }
 0x3db   : > { %v955_v19 = vpop.f32.mrf.mxu3  ;;  %v984_v20 = vpop.f32.mrf.mxu0  ;;  %v1091_v21 = vld [vmem:[#allocation4] sm:$0xff] }
 0x3dc   : > { %1024 = vst.msk [vmem:[#allocation4 + $0x8] sm:$0xff] %vm2243_vm8, %v1020_v18  ;;  %v956_v22 = vadd.f32 %v955_v19, %v913_v17  ;;  %1099 = vrot.lane.b32.xlu0 %v1091_v21, %s1530_s15  ;;  %1071 = vrot.lane.b32.xlu2 %v1091_v21, %s1536_s18  ;;  %vm2245_vm8 = vmmov %vm2242_vm3 }
 0x3dd   : > { %v1013_v23 = vpop.f32.mrf.mxu1  ;;  %1031 = vst.msk [vmem:[#allocation3] sm:$0xff] %vm2244_vm9, %v1091_v21  ;;  %vm2246_vm9 = vmmov %vm2242_vm3 }
 0x3de   : > { %v985_v24 = vadd.f32 %v984_v20, %v956_v22 }
 0x3e0   : > { %v1014_v25 = vadd.f32 %v1013_v23, %v985_v24 }
 0x3e2   : > { %v1021_v26 = vmax.f32 %v1014_v25, 0.0 }
 0x3e3   : > { %v958_v27 = vpop.f32.mrf.mxu3  ;;  %v987_v28 = vpop.f32.mrf.mxu0  ;;  %v1092_v29 = vld [vmem:[#allocation4 + $0x8] sm:$0xff] }
 0x3e4   : > { %1025 = vst.msk [vmem:[#allocation4 + $0x10] sm:$0xff] %vm2242_vm3, %v1021_v26  ;;  %v959_v30 = vadd.f32 %v958_v27, %v918_v0  ;;  %1101 = vrot.lane.b32.xlu1 %v1092_v29, %s1530_s15  ;;  %1211 = vrot.lane.b32.xlu0 %v1091_v21, %s1534_s13 }
 0x3e5   : > { %1183 = vrot.lane.b32.xlu2 %v1091_v21, %s1535_s17  ;;  %v1016_v31 = vpop.f32.mrf.mxu1  ;;  %1032 = vst.msk [vmem:[#allocation3 + $0x8] sm:$0xff] %vm2245_vm8, %v1092_v29  ;;  %vm2247_vm8 = vmmov %vm2242_vm3 }
 0x3e6   : > { %v988_v32 = vadd.f32 %v987_v28, %v959_v30 }
 0x3e8   : > { %v1017_v33 = vadd.f32 %v1016_v31, %v988_v32 }
 0x3ea   : > { %v1022_v34 = vmax.f32 %v1017_v33, 0.0 }
 0x3eb   : > { %v1093_v35 = vld [vmem:[#allocation4 + $0x10] sm:$0xff] }
 0x3ec   : > { %1026 = vst.msk [vmem:[#allocation4 + $0x18] sm:$0xff] %vm2246_vm9, %v1022_v34  ;;  %1213 = vrot.lane.b32.xlu1 %v1092_v29, %s1534_s13  ;;  %1073 = vrot.lane.b32.xlu0 %v1092_v29, %s1536_s18  ;;  %vm2248_vm9 = vcmask 523712  }
 0x3ed   : > { %1103 = vrot.lane.b32.xlu2 %v1093_v35, %s1530_s15  ;;  %1033 = vst.msk [vmem:[#allocation3 + $0x10] sm:$0xff] %vm2242_vm3, %v1093_v35  ;;  %vm2249_vm3 = vmmov %vm2248_vm9 }
 0x3f3   : > { %v1206_v36 = vld [vmem:[#allocation4 + $0x18] sm:$0xff] }
 0x3f4   : > { %1075 = vrot.lane.b32.xlu1 %v1093_v35, %s1536_s18  ;;  %1185 = vrot.lane.b32.xlu0 %v1092_v29, %s1535_s17  ;;  %1034 = vst.msk [vmem:[#allocation3 + $0x18] sm:$0xff] %vm2247_vm8, %v1206_v36  ;;  %vm2250_vm8 = vmmov %vm2249_vm3  ;;  %v1277_v33 = vld [vmem:[#allocation3 + $0x10] sm:$0xff] }
 0x3f5   : > { %1215 = vrot.lane.b32.xlu2 %v1093_v35, %s1534_s13 }
 0x3fb   : > { %v1278_v31 = vld [vmem:[#allocation3 + $0x18] sm:$0xff] }
 0x3fc   : > { %1187 = vrot.lane.b32.xlu1 %v1093_v35, %s1535_s17  ;;  %1217 = vrot.lane.b32.xlu0 %v1206_v36, %s1534_s13 }
 0x3fd   : > { %1045 = vrot.lane.b32.xlu2 %v1092_v29, %s1531_s16 }
 0x404   : > { %1105 = vrot.lane.b32.xlu1 %v1206_v36, %s1530_s15  ;;  %1047 = vrot.lane.b32.xlu0 %v1093_v35, %s1531_s16 }
 0x405   : > { %1077 = vrot.lane.b32.xlu2 %v1206_v36, %s1536_s18 }
 0x40c   : > { %1159 = vrot.lane.b32.xlu0 %v1093_v35, %s1537_s19  ;;  %1043 = vrot.lane.b32.xlu1 %v1091_v21, %s1531_s16 }
 0x40d   : > { %1189 = vrot.lane.b32.xlu2 %v1206_v36, %s1535_s17 }
 0x414   : > { %1155 = vrot.lane.b32.xlu0 %v1091_v21, %s1537_s19  ;;  %1049 = vrot.lane.b32.xlu1 %v1206_v36, %s1531_s16 }
 0x415   : > { %1157 = vrot.lane.b32.xlu2 %v1092_v29, %s1537_s19 }
 0x41c   : > { %1129 = vrot.lane.b32.xlu0 %v1092_v29, %s1529_s14  ;;  %1161 = vrot.lane.b32.xlu1 %v1206_v36, %s1537_s19 }
 0x41d   : > { %1131 = vrot.lane.b32.xlu2 %v1093_v35, %s1529_s14 }
 0x424   : > { %1243 = vrot.lane.b32.xlu0 %v1093_v35, %s1538_s20  ;;  %1133 = vrot.lane.b32.xlu1 %v1206_v36, %s1529_s14 }
 0x425   : > { %1245 = vrot.lane.b32.xlu2 %v1206_v36, %s1538_s20  ;;  %v1276_v36 = vld [vmem:[#allocation3 + $0x8] sm:$0xff] }
 0x42c   : > { %1313 = vperm.xlu0 %1519, %v1271_v37   ;;  %1127 = vrot.lane.b32.xlu1 %v1091_v21, %s1529_s14 }
 0x42d   : > { %1239 = vrot.lane.b32.xlu2 %v1091_v21, %s1538_s20 }
 0x434   : > { %1328 = vperm.xlu0 %1519, %v1274_v38   ;;  %1241 = vrot.lane.b32.xlu1 %v1092_v29, %s1538_s20  ;;  %v1259_v38 = vld [vmem:[%s2218_s7] sm:$0xff] }
 0x435   : > { %1323 = vperm.xlu2 %1518, %v1273_v39   ;;  %v1275_v39 = vld [vmem:[#allocation3] sm:$0xff] }
 0x436   : > { %v1072_v40 = vpop.permute.xlu2 %1071 }
 0x437   : > { %1083 = vst.msk [vmem:[#allocation3 + $0x40] sm:$0xff] %vm246_vm12, %v1072_v40 }
 0x438   : > { %1087 = vst.msk [vmem:[#allocation3 + $0x40] sm:$0xff] %vm251_vm13, %v1532_v8 }
 0x43c   : > { %1318 = vperm.xlu1 %1520, %v1272_v41  }
 0x43f   : > { %v1184_v42 = vpop.permute.xlu2 %1183  ;;  %v1283_v20 = vld [vmem:[#allocation3 + $0x40] sm:$0xff] }
 0x440   : > { %1195 = vst.msk [vmem:[#allocation3 + $0xc0] sm:$0xff] %vm366_vm10, %v1184_v42 }
 0x441   : > { %1199 = vst.msk [vmem:[#allocation3 + $0xc0] sm:$0xff] %vm371_vm11, %v1532_v8 }
 0x447   : > { %v1104_v43 = vpop.permute.xlu2 %1103 }
 0x448   : > { %1113 = vst.msk [vmem:[#allocation3 + $0x70] sm:$0xff] %vm276_vm2, %v1104_v43  ;;  %v1299_v13 = vld [vmem:[#allocation3 + $0xc0] sm:$0xff] }
 0x449   : > { %1117 = vst.msk [vmem:[#allocation3 + $0x70] sm:$0xff] %vm2248_vm9, %v1532_v8  ;;  %vm2264_vm9 = vcmask 523264  }
 0x44e   : > { %v1100_v44 = vpop.permute.xlu0 %1099 }
 0x44f   : > { %1111 = vst.msk [vmem:[#allocation3 + $0x60] sm:$0xff] %vm276_vm2, %v1100_v44  ;;  %v1216_v45 = vpop.permute.xlu2 %1215  ;;  %v1260_v44 = vld [vmem:[%s2218_s7 + $0x8] sm:$0xff] }
 0x450   : > { %1115 = vst.msk [vmem:[#allocation3 + $0x60] sm:$0xff] %vm2249_vm3, %v1532_v8  ;;  %v1289_v5 = vld [vmem:[#allocation3 + $0x70] sm:$0xff] }
 0x451   : > { %1225 = vst.msk [vmem:[#allocation3 + $0xf0] sm:$0xff] %vm396_vm0, %v1216_v45 }
 0x452   : > { %1229 = vst.msk [vmem:[#allocation3 + $0xf0] sm:$0xff] %vm401_vm1, %v1532_v8 }
 0x456   : > { %v1102_v46 = vpop.permute.xlu1 %1101  ;;  %v1212_v47 = vpop.permute.xlu0 %1211 }
 0x457   : > { %1112 = vst.msk [vmem:[#allocation3 + $0x68] sm:$0xff] %vm276_vm2, %v1102_v46  ;;  %v1046_v48 = vpop.permute.xlu2 %1045  ;;  %v1287_v10 = vld [vmem:[#allocation3 + $0x60] sm:$0xff]  ;;  %v1262_v46 = vld [vmem:[%s2218_s7 + $0x18] sm:$0xff] }
 0x458   : > { %1116 = vst.msk [vmem:[#allocation3 + $0x68] sm:$0xff] %vm2250_vm8, %v1532_v8 }
 0x459   : > { %1223 = vst.msk [vmem:[#allocation3 + $0xe0] sm:$0xff] %vm396_vm0, %v1212_v47  ;;  %v1305_v62 = vld [vmem:[#allocation3 + $0xf0] sm:$0xff]  ;;  %v1263_v47 = vld [vmem:[%s2218_s7 + $0x20] sm:$0xff] }
 0x45a   : > { %1227 = vst.msk [vmem:[#allocation3 + $0xe0] sm:$0xff] %vm401_vm1, %v1532_v8 }
 0x45b   : > { %1056 = vst.msk [vmem:[#allocation3 + $0x28] sm:$0xff] %vm216_vm4, %v1046_v48 }
 0x45c   : > { %1060 = vst.msk [vmem:[#allocation3 + $0x28] sm:$0xff] %vm221_vm5, %v1532_v8 }
 0x45e   : > { %v1214_v49 = vpop.permute.xlu1 %1213  ;;  %v1074_v50 = vpop.permute.xlu0 %1073 }
 0x45f   : > { %1224 = vst.msk [vmem:[#allocation3 + $0xe8] sm:$0xff] %vm396_vm0, %v1214_v49  ;;  %v1078_v51 = vpop.permute.xlu2 %1077  ;;  %v1288_v7 = vld [vmem:[#allocation3 + $0x68] sm:$0xff] }
 0x460   : > { %1228 = vst.msk [vmem:[#allocation3 + $0xe8] sm:$0xff] %vm401_vm1, %v1532_v8 }
 0x461   : > { %1084 = vst.msk [vmem:[#allocation3 + $0x48] sm:$0xff] %vm246_vm12, %v1074_v50  ;;  %v1303_v0 = vld [vmem:[#allocation3 + $0xe0] sm:$0xff]  ;;  %v1265_v50 = vld [vmem:[%s2218_s7 + $0x30] sm:$0xff] }
 0x462   : > { %1088 = vst.msk [vmem:[#allocation3 + $0x48] sm:$0xff] %vm251_vm13, %v1532_v8 }
 0x463   : > { %1086 = vst.msk [vmem:[#allocation3 + $0x58] sm:$0xff] %vm246_vm12, %v1078_v51  ;;  %v1280_v25 = vld [vmem:[#allocation3 + $0x28] sm:$0xff]  ;;  %v1266_v51 = vld [vmem:[%s2218_s7 + $0x38] sm:$0xff] }
 0x464   : > { %1090 = vst.msk [vmem:[#allocation3 + $0x58] sm:$0xff] %vm251_vm13, %v1532_v8 }
 0x466   : > { %v1076_v52 = vpop.permute.xlu1 %1075  ;;  %v1186_v53 = vpop.permute.xlu0 %1185 }
 0x467   : > { %1085 = vst.msk [vmem:[#allocation3 + $0x50] sm:$0xff] %vm246_vm12, %v1076_v52  ;;  %v1190_v54 = vpop.permute.xlu2 %1189  ;;  %v1304_v63 = vld [vmem:[#allocation3 + $0xe8] sm:$0xff]  ;;  %vm2253_vm12 = vcmask 523632   ;;  %v1268_v52 = vld [vmem:[%s2218_s7 + $0x48] sm:$0xff] }
 0x468   : > { %1089 = vst.msk [vmem:[#allocation3 + $0x50] sm:$0xff] %vm251_vm13, %v1532_v8 }
 0x469   : > { %1196 = vst.msk [vmem:[#allocation3 + $0xc8] sm:$0xff] %vm366_vm10, %v1186_v53  ;;  %v1284_v18 = vld [vmem:[#allocation3 + $0x48] sm:$0xff]  ;;  %v1264_v53 = vld [vmem:[%s2218_s7 + $0x28] sm:$0xff] }
 0x46a   : > { %1200 = vst.msk [vmem:[#allocation3 + $0xc8] sm:$0xff] %vm371_vm11, %v1532_v8 }
 0x46b   : > { %1198 = vst.msk [vmem:[#allocation3 + $0xd8] sm:$0xff] %vm366_vm10, %v1190_v54  ;;  %v1286_v12 = vld [vmem:[#allocation3 + $0x58] sm:$0xff]  ;;  %v1269_v54 = vld [vmem:[%s2218_s7 + $0x50] sm:$0xff] }
 0x46c   : > { %1202 = vst.msk [vmem:[#allocation3 + $0xd8] sm:$0xff] %vm371_vm11, %v1532_v8 }
 0x46e   : > { %v1188_v55 = vpop.permute.xlu1 %1187  ;;  %v1218_v56 = vpop.permute.xlu0 %1217 }
 0x46f   : > { %1197 = vst.msk [vmem:[#allocation3 + $0xd0] sm:$0xff] %vm366_vm10, %v1188_v55  ;;  %v1158_v57 = vpop.permute.xlu2 %1157  ;;  %vm2251_vm10 = vmmov %vm2249_vm3  ;;  %v1285_v17 = vld [vmem:[#allocation3 + $0x50] sm:$0xff]  ;;  %v1267_v55 = vld [vmem:[%s2218_s7 + $0x40] sm:$0xff] }
 0x470   : > { %1201 = vst.msk [vmem:[#allocation3 + $0xd0] sm:$0xff] %vm371_vm11, %v1532_v8  ;;  %vm2252_vm11 = vcmask 375808   ;;  %vm2265_vm3 = vmmov %vm2264_vm9 }
 0x471   : > { %1226 = vst.msk [vmem:[#allocation3 + $0xf8] sm:$0xff] %vm396_vm0, %v1218_v56  ;;  %v1300_v11 = vld [vmem:[#allocation3 + $0xc8] sm:$0xff]  ;;  %vm2254_vm13 = vmmov %vm2252_vm11  ;;  %v1270_v56 = vld [vmem:[%s2218_s7 + $0x58] sm:$0xff] }
 0x472   : > { %1230 = vst.msk [vmem:[#allocation3 + $0xf8] sm:$0xff] %vm401_vm1, %v1532_v8  ;;  %vm2255_vm0 = vmmov %vm2253_vm12 }
 0x473   : > { %1168 = vst.msk [vmem:[#allocation3 + $0xa8] sm:$0xff] %vm336_vm14, %v1158_v57  ;;  %v1302_v6 = vld [vmem:[#allocation3 + $0xd8] sm:$0xff]  ;;  %vm2256_vm1 = vmmov %vm2252_vm11 }
 0x474   : > { %1172 = vst.msk [vmem:[#allocation3 + $0xa8] sm:$0xff] %vm341_vm15, %v1532_v8  ;;  %vm2266_vm8 = vmmov %vm2265_vm3 }
 0x476   : > { %v1106_v58 = vpop.permute.xlu1 %1105  ;;  %v1048_v59 = vpop.permute.xlu0 %1047 }
 0x477   : > { %1114 = vst.msk [vmem:[#allocation3 + $0x78] sm:$0xff] %vm276_vm2, %v1106_v58  ;;  %v1132_v60 = vpop.permute.xlu2 %1131  ;;  %v1301_v9 = vld [vmem:[#allocation3 + $0xd0] sm:$0xff]  ;;  %vm2257_vm2 = vmmov %vm2255_vm0 }
 0x478   : > { %1118 = vst.msk [vmem:[#allocation3 + $0x78] sm:$0xff] %vm2251_vm10, %v1532_v8  ;;  %vm2267_vm10 = vmmov %vm2265_vm3 }
 0x479   : > { %1057 = vst.msk [vmem:[#allocation3 + $0x30] sm:$0xff] %vm216_vm4, %v1048_v59  ;;  %v1306_v61 = vld [vmem:[#allocation3 + $0xf8] sm:$0xff] }
 0x47a   : > { %1061 = vst.msk [vmem:[#allocation3 + $0x30] sm:$0xff] %vm221_vm5, %v1532_v8  ;;  %1372 = vmatpush.msra.mxu3 %v1306_v61 }
 0x47b   : > { %1141 = vst.msk [vmem:[#allocation3 + $0x90] sm:$0xff] %vm306_vm6, %v1132_v60  ;;  %v1296_v32 = vld [vmem:[#allocation3 + $0xa8] sm:$0xff] }
 0x47c   : > { %1145 = vst.msk [vmem:[#allocation3 + $0x90] sm:$0xff] %vm311_vm7, %v1532_v8  ;;  %1373 = vmatpush.msra.mxu3 %v1305_v62 }
 0x47e   : > { %v1160_v1 = vpop.permute.xlu0 %1159  ;;  %v1044_v2 = vpop.permute.xlu1 %1043  ;;  %1374 = vmatpush.msra.mxu3 %v1304_v63 }
 0x47f   : > { %1169 = vst.msk [vmem:[#allocation3 + $0xb0] sm:$0xff] %vm336_vm14, %v1160_v1  ;;  %v1246_v3 = vpop.permute.xlu2 %1245  ;;  %v1290_v4 = vld [vmem:[#allocation3 + $0x78] sm:$0xff] }
 0x480   : > { %1173 = vst.msk [vmem:[#allocation3 + $0xb0] sm:$0xff] %vm341_vm15, %v1532_v8  ;;  %1343 = vmatpush.msrb.mxu2 %v1290_v4  ;;  %1375 = vmatpush.msra.mxu3 %v1303_v0 }
 0x481   : > { %1254 = vst.msk [vmem:[#allocation3 + $0x118] sm:$0xff] %vm2252_vm11, %v1246_v3  ;;  %v1281_v24 = vld [vmem:[#allocation3 + $0x30] sm:$0xff] }
 0x482   : > { %1258 = vst.msk [vmem:[#allocation3 + $0x118] sm:$0xff] %vm2253_vm12, %v1532_v8  ;;  %1344 = vmatpush.msrb.mxu2 %v1289_v5  ;;  %1376 = vmatpush.msra.mxu3 %v1302_v6 }
 0x483   : > { %1055 = vst.msk [vmem:[#allocation3 + $0x20] sm:$0xff] %vm216_vm4, %v1044_v2  ;;  %v1293_v41 = vld [vmem:[#allocation3 + $0x90] sm:$0xff] }
 0x484   : > { %1059 = vst.msk [vmem:[#allocation3 + $0x20] sm:$0xff] %vm221_vm5, %v1532_v8  ;;  %1345 = vmatpush.msrb.mxu2 %v1288_v7  ;;  %1377 = vmatpush.msra.mxu3 %v1301_v9 }
 0x486   : > { %v1156_v14 = vpop.permute.xlu0 %1155  ;;  %1346 = vmatpush.msrb.mxu2 %v1287_v10  ;;  %v1050_v15 = vpop.permute.xlu1 %1049  ;;  %1378 = vmatpush.msra.mxu3 %v1300_v11 }
 0x487   : > { %1167 = vst.msk [vmem:[#allocation3 + $0xa0] sm:$0xff] %vm336_vm14, %v1156_v14  ;;  %v1240_v16 = vpop.permute.xlu2 %1239  ;;  %v1297_v30 = vld [vmem:[#allocation3 + $0xb0] sm:$0xff] }
 0x488   : > { %1171 = vst.msk [vmem:[#allocation3 + $0xa0] sm:$0xff] %vm341_vm15, %v1532_v8  ;;  %1347 = vmatpush.msrb.mxu2 %v1286_v12  ;;  %1379 = vmatpush.msra.mxu3 %v1299_v13 }
 0x489   : > { %1251 = vst.msk [vmem:[#allocation3 + $0x100] sm:$0xff] %vm2254_vm13, %v1240_v16  ;;  %v1310_v19 = vld [vmem:[#allocation3 + $0x118] sm:$0xff] }
 0x48a   : > { %1255 = vst.msk [vmem:[#allocation3 + $0x100] sm:$0xff] %vm2255_vm0, %v1532_v8  ;;  %1348 = vmatpush.msrb.mxu2 %v1285_v17  ;;  %1413 = vmatpush.msra.mxu0 %v1310_v19 }
 0x48b   : > { %1058 = vst.msk [vmem:[#allocation3 + $0x38] sm:$0xff] %vm216_vm4, %v1050_v15  ;;  %v1279_v28 = vld [vmem:[#allocation3 + $0x20] sm:$0xff]  ;;  %vm2260_vm4 = vcmask 261120  }
 0x48c   : > { %1062 = vst.msk [vmem:[#allocation3 + $0x38] sm:$0xff] %vm221_vm5, %v1532_v8  ;;  %1349 = vmatpush.msrb.mxu2 %v1284_v18  ;;  %vm2261_vm5 = vmmov %vm2260_vm4 }
 0x48e   : > { %v1130_v21 = vpop.permute.xlu0 %1129  ;;  %1350 = vmatpush.msrb.mxu2 %v1283_v20  ;;  %v1162_v22 = vpop.permute.xlu1 %1161 }
 0x48f   : > { %1140 = vst.msk [vmem:[#allocation3 + $0x88] sm:$0xff] %vm306_vm6, %v1130_v21  ;;  %v1295_v34 = vld [vmem:[#allocation3 + $0xa0] sm:$0xff]  ;;  %v1324_v11 = vpop.permute.xlu2 %1323 }
 0x490   : > { %1144 = vst.msk [vmem:[#allocation3 + $0x88] sm:$0xff] %vm311_vm7, %v1532_v8 }
 0x491   : > { %1170 = vst.msk [vmem:[#allocation3 + $0xb8] sm:$0xff] %vm336_vm14, %v1162_v22  ;;  %vm2258_vm14 = vmmov %vm2256_vm1  ;;  %v1307_v49 = vld [vmem:[#allocation3 + $0x100] sm:$0xff] }
 0x492   : > { %1174 = vst.msk [vmem:[#allocation3 + $0xb8] sm:$0xff] %vm341_vm15, %v1532_v8  ;;  %vm2259_vm15 = vmmov %vm2255_vm0 }
 0x493   : > { %v1282_v23 = vld [vmem:[#allocation3 + $0x38] sm:$0xff] }
 0x494   : > { %1351 = vmatpush.msrb.mxu2 %v1282_v23 }
 0x496   : > { %1352 = vmatpush.msrb.mxu2 %v1281_v24  ;;  %v1244_v26 = vpop.permute.xlu0 %1243  ;;  %v1134_v27 = vpop.permute.xlu1 %1133 }
 0x497   : > { %1253 = vst.msk [vmem:[#allocation3 + $0x110] sm:$0xff] %vm2256_vm1, %v1244_v26  ;;  %v1292_v42 = vld [vmem:[#allocation3 + $0x88] sm:$0xff] }
 0x498   : > { %1353 = vmatpush.msrb.mxu2 %v1280_v25  ;;  %1257 = vst.msk [vmem:[#allocation3 + $0x110] sm:$0xff] %vm2257_vm2, %v1532_v8 }
 0x499   : > { %1142 = vst.msk [vmem:[#allocation3 + $0x98] sm:$0xff] %vm306_vm6, %v1134_v27  ;;  %v1298_v29 = vld [vmem:[#allocation3 + $0xb8] sm:$0xff] }
 0x49a   : > { %1354 = vmatpush.msrb.mxu2 %v1279_v28  ;;  %1146 = vst.msk [vmem:[#allocation3 + $0x98] sm:$0xff] %vm311_vm7, %v1532_v8  ;;  %1380 = vmatpush.msra.mxu3 %v1298_v29 }
 0x49c   : > { %1355 = vmatpush.msrb.mxu2 %v1278_v31  ;;  %1381 = vmatpush.msra.mxu3 %v1297_v30 }
 0x49e   : > { %1356 = vmatpush.msrb.mxu2 %v1277_v33  ;;  %1382 = vmatpush.msra.mxu3 %v1296_v32  ;;  %v1128_v35 = vpop.permute.xlu1 %1127  ;;  %v1314_v58 = vpop.permute.xlu0 %1313 }
 0x49f   : > { %1139 = vst.msk [vmem:[#allocation3 + $0x80] sm:$0xff] %vm306_vm6, %v1128_v35  ;;  %v1309_v37 = vld [vmem:[#allocation3 + $0x110] sm:$0xff]  ;;  %vm2262_vm6 = vmmov %vm2260_vm4 }
 0x4a0   : > { %1357 = vmatpush.msrb.mxu2 %v1276_v36  ;;  %1143 = vst.msk [vmem:[#allocation3 + $0x80] sm:$0xff] %vm311_vm7, %v1532_v8  ;;  %1383 = vmatpush.msra.mxu3 %v1295_v34  ;;  %vm2263_vm7 = vmmov %vm2260_vm4 }
 0x4a1   : > { %v1294_v40 = vld [vmem:[#allocation3 + $0x98] sm:$0xff]  ;;  %1414 = vmatpush.msra.mxu0 %v1309_v37 }
 0x4a2   : > { %1358 = vmatpush.msrb.mxu2 %v1275_v39  ;;  %1384 = vmatpush.msra.mxu3 %v1294_v40 }
 0x4a3   : > { %1359 = vmatmul.f32.vlgmr.msrb.gmra.mxu2 %v1259_v38 }
 0x4a4   : > { %1385 = vmatpush.msra.mxu3 %v1293_v41 }
 0x4a6   : > { %1386 = vmatpush.msra.mxu3 %v1292_v42  ;;  %v1242_v43 = vpop.permute.xlu1 %1241  ;;  %v1329_v19 = vpop.permute.xlu0 %1328 }
 0x4a7   : > { %1252 = vst.msk [vmem:[#allocation3 + $0x108] sm:$0xff] %vm2258_vm14, %v1242_v43  ;;  %v1291_v45 = vld [vmem:[#allocation3 + $0x80] sm:$0xff] }
 0x4a8   : > { %1256 = vst.msk [vmem:[#allocation3 + $0x108] sm:$0xff] %vm2259_vm15, %v1532_v8  ;;  %1387 = vmatpush.msra.mxu3 %v1291_v45  ;;  %v1261_v8 = vld [vmem:[%s2218_s7 + $0x10] sm:$0xff] }
 0x4a9   : > { %1388 = vmatmul.f32.vlgmr.msra.gmra.mxu3 %v1260_v44 }
 0x4ab   : > { %1362 = vmatmul.f32.gmra.mxu2 %v1262_v46 }
 0x4ae   : > { %v1319_v2 = vpop.permute.xlu1 %1318 }
 0x4af   : > { %v1308_v48 = vld [vmem:[#allocation3 + $0x108] sm:$0xff] }
 0x4b0   : > { %1415 = vmatpush.msra.mxu0 %v1308_v48 }
 0x4b1   : > { %1391 = vmatmul.f32.gmra.mxu3 %v1263_v47 }
 0x4b2   : > { %1416 = vmatpush.msra.mxu0 %v1307_v49 }
 0x4b3   : > { %1365 = vmatmul.f32.gmra.mxu2 %v1265_v50  ;;  %1491 = vmatmul.msk.f32.vlgmr.msra.gmra.mxu0 %vm2260_vm4, %v1261_v8 }
 0x4b9   : > { %1394 = vmatmul.f32.gmra.mxu3 %v1266_v51 }
 0x4bb   : > { %1368 = vmatmul.f32.gmra.mxu2 %v1268_v52  ;;  %1492 = vmatmul.msk.f32.gmra.mxu0 %vm2261_vm5, %v1264_v53 }
 0x4c1   : > { %1397 = vmatmul.f32.gmra.mxu3 %v1269_v54 }
 0x4c3   : > { %1493 = vmatmul.msk.f32.gmra.mxu0 %vm2262_vm6, %v1267_v55 }
 0x4cb   : > { %1494 = vmatmul.msk.f32.gmra.mxu0 %vm2263_vm7, %v1270_v56 }
 0x526   : > { %v1360_v57 = vpop.f32.mrf.mxu2 }
 0x527   : > { %v1361_v60 = vadd.f32 %v1360_v57, %v1314_v58 }
 0x52c   : > { %v1389_v59 = vpop.f32.mrf.mxu3 }
 0x52d   : > { %v1390_v62 = vadd.f32 %v1389_v59, %v1361_v60 }
 0x52e   : > { %v1363_v61 = vpop.f32.mrf.mxu2 }
 0x52f   : > { %v1364_v4 = vadd.f32 %v1363_v61, %v1319_v2 }
 0x530   : > { %v1418_v63 = vpop.f32.mrf.mxu0 }
 0x531   : > { %v1419_v0 = vadd.f32 %v1418_v63, %v1390_v62 }
 0x533   : > { %v1430_v1 = vmax.f32 %v1419_v0, 0.0 }
 0x534   : > { %v1392_v3 = vpop.f32.mrf.mxu3 }
 0x535   : > { %1436 = vst.msk [vmem:[%s1435_s12] sm:$0xff] %vm2264_vm9, %v1430_v1  ;;  %v1393_v5 = vadd.f32 %v1392_v3, %v1364_v4 }
 0x536   : > { %v1366_v6 = vpop.f32.mrf.mxu2 }
 0x537   : > { %v1367_v13 = vadd.f32 %v1366_v6, %v1324_v11 }
 0x538   : > { %v1421_v7 = vpop.f32.mrf.mxu0 }
 0x539   : > { %v1422_v9 = vadd.f32 %v1421_v7, %v1393_v5 }
 0x53b   : > { %v1431_v10 = vmax.f32 %v1422_v9, 0.0 }
 0x53c   : > { %v1395_v12 = vpop.f32.mrf.mxu3 }
 0x53d   : > { %1437 = vst.msk [vmem:[%s1435_s12 + $0x8] sm:$0xff] %vm2265_vm3, %v1431_v10  ;;  %v1396_v14 = vadd.f32 %v1395_v12, %v1367_v13 }
 0x53e   : > { %v1369_v17 = vpop.f32.mrf.mxu2 }
 0x53f   : > { %v1370_v21 = vadd.f32 %v1369_v17, %v1329_v19 }
 0x540   : > { %v1424_v15 = vpop.f32.mrf.mxu0 }
 0x541   : > { %v1425_v16 = vadd.f32 %v1424_v15, %v1396_v14 }
 0x543   : > { %v1432_v18 = vmax.f32 %v1425_v16, 0.0 }
 0x544   : > { %v1398_v20 = vpop.f32.mrf.mxu3 }
 0x545   : > { %1438 = vst.msk [vmem:[%s1435_s12 + $0x10] sm:$0xff] %vm2266_vm8, %v1432_v18  ;;  %v1399_v22 = vadd.f32 %v1398_v20, %v1370_v21 }
 0x548   : > { %v1427_v23 = vpop.f32.mrf.mxu0 }
 0x549   : > { %v1428_v24 = vadd.f32 %v1427_v23, %v1399_v22  ;;  %36 = sbr.rel (!%p34_p0) target bundleno = 1 (0x1), region = 68 }
 0x54b   : > { %v1433_v25 = vmax.f32 %v1428_v24, 0.0 }
 0x54d   : > { %1439 = vst.msk [vmem:[%s1435_s12 + $0x18] sm:$0xff] %vm2267_vm10, %v1433_v25 }

</bundles_post_ra>
